<compile_context>
chip_gen: v7x
topology: tpu7x:2x2x1
jax: 0.10.0
libtpu: 0.0.40
codegen_flags: <defaults>
</compile_context>

<pallas_src>
import math

import jax
import jax.numpy as jnp
from jax.experimental import pallas as pl
from jax.experimental.pallas import tpu as pltpu


# ----------------------------- model dims (small) -----------------------------
LAYER_N = 2
VOCAB = 32
MAX_LEN = 16
HEAD_N = 4
HIDDEN = 32
FFN = 64
B = 2
S = 8
BS = B * S
HD = HIDDEN // HEAD_N
W3 = 3 * HIDDEN          # fused QKV width; also the packed-vector row width (>= FFN)
LN_EPS = 1e-5


def _layer_norm(x, g, b):
    mu = jnp.mean(x, axis=-1, keepdims=True)
    var = jnp.mean((x - mu) ** 2, axis=-1, keepdims=True)
    return (x - mu) * jax.lax.rsqrt(var + LN_EPS) * g + b


# ------------------------------ Pallas kernel --------------------------------
def encoder_kernel(ids_ref, bias_ref, emb_ref, pe_ref,
                   wqkv_ref, wo_ref, w1_ref, w2_ref, vecs_ref,
                   out_ref, score_ref):
    # --- embedding gather via one-hot MXU matmul (exact 0/1 bf16 LHS) + PE add ---
    iota = jax.lax.broadcasted_iota(jnp.int32, (BS, VOCAB), 1)
    onehot = (ids_ref[...] == iota).astype(jnp.float32)                  # (BS, V)
    x = jnp.dot(onehot.astype(jnp.bfloat16), emb_ref[...],
                preferred_element_type=jnp.float32) + pe_ref[...]        # (BS, H) f32

    bias = bias_ref[...]            # (BS, BS) additive mask: block-diag + key padding
    scale = 1.0 / math.sqrt(HD)

    for l in range(LAYER_N):                   # static layer loop (weights loaded once)
        wqkv = wqkv_ref[l]                     # (H, 3H) bf16
        wo = wo_ref[l]                         # (H, H)  bf16
        w1 = w1_ref[l]                         # (H, F)  bf16
        w2 = w2_ref[l]                         # (F, H)  bf16
        vec = vecs_ref[l]                      # (8, 3H) f32 packed biases / LN params
        bqkv = vec[0:1, :]
        bo = vec[1:2, :HIDDEN]
        b1 = vec[2:3, :FFN]
        b2 = vec[3:4, :HIDDEN]
        ln1g = vec[4:5, :HIDDEN]
        ln1b = vec[5:6, :HIDDEN]
        ln2g = vec[6:7, :HIDDEN]
        ln2b = vec[7:8, :HIDDEN]

        # fused QKV projection over the full batch slab (one MXU fill, bf16 operands)
        qkv = jnp.dot(x.astype(jnp.bfloat16), wqkv,
                      preferred_element_type=jnp.float32) + bqkv         # (BS, 3H) f32

        heads = []
        ps = []
        for h in range(HEAD_N):                # static head loop (tiny f32 matmuls)
            lo = h * HD
            qh = qkv[:, lo:lo + HD]                                      # (BS, hd)
            kh = qkv[:, HIDDEN + lo:HIDDEN + lo + HD]                    # (BS, hd)
            vh = qkv[:, 2 * HIDDEN + lo:2 * HIDDEN + lo + HD]            # (BS, hd)

            s = jnp.dot(qh, kh.T, preferred_element_type=jnp.float32) * scale + bias
            s = s - jnp.max(s, axis=-1, keepdims=True)
            e = jnp.exp(s)
            p = e * pl.reciprocal(jnp.sum(e, axis=-1, keepdims=True), approx=True)
            if l == LAYER_N - 1:
                ps.append(p)                   # scores only needed for last layer

            heads.append(jnp.dot(p, vh, preferred_element_type=jnp.float32))  # (BS, hd)

        # single output projection: lane-concat the head outputs, one (BS,H)x(H,H) dot
        o = jnp.concatenate(heads, axis=-1)                              # (BS, H)
        attn = jnp.dot(o.astype(jnp.bfloat16), wo,
                       preferred_element_type=jnp.float32) + bo

        # residual + LayerNorm 1 (full batch slab)
        y = _layer_norm(x + attn, ln1g, ln1b)

        # FFN (full batch slab, bf16 operands)
        h1 = jnp.maximum(jnp.dot(y.astype(jnp.bfloat16), w1,
                                 preferred_element_type=jnp.float32) + b1, 0.0)
        f = jnp.dot(h1.astype(jnp.bfloat16), w2,
                    preferred_element_type=jnp.float32) + b2

        # residual + LayerNorm 2
        x = _layer_norm(y + f, ln2g, ln2b)

        if l == LAYER_N - 1:
            # one lane-dense (BS, HEAD_N*BS) = (16, 64) store of all heads' scores
            score_ref[...] = jnp.concatenate(ps, axis=-1)

    out_ref[...] = x                                                     # one store


def _encoder_pallas(ids, bias, emb, pe, wqkv, wo, w1, w2, vecs):
    z2 = lambda i: (0, 0)
    z3 = lambda i: (0, 0, 0)
    return pl.pallas_call(
        encoder_kernel,
        grid=(1,),
        in_specs=[
            pl.BlockSpec((BS, 1), z2),                    # token ids
            pl.BlockSpec((BS, BS), z2),                   # additive attention bias
            pl.BlockSpec((VOCAB, HIDDEN), z2),            # embedding table (bf16)
            pl.BlockSpec((BS, HIDDEN), z2),               # positional encoding (tiled)
            pl.BlockSpec((LAYER_N, HIDDEN, W3), z3),      # fused QKV weights (bf16)
            pl.BlockSpec((LAYER_N, HIDDEN, HIDDEN), z3),  # output proj weights (bf16)
            pl.BlockSpec((LAYER_N, HIDDEN, FFN), z3),     # FFN up weights (bf16)
            pl.BlockSpec((LAYER_N, FFN, HIDDEN), z3),     # FFN down weights (bf16)
            pl.BlockSpec((LAYER_N, 8, W3), z3),           # packed biases + LN params
        ],
        out_specs=[
            pl.BlockSpec((BS, HIDDEN), z2),
            pl.BlockSpec((BS, HEAD_N * BS), z2),
        ],
        out_shape=[
            jax.ShapeDtypeStruct((BS, HIDDEN), jnp.float32),
            jax.ShapeDtypeStruct((BS, HEAD_N * BS), jnp.float32),
        ],
        compiler_params=pltpu.CompilerParams(dimension_semantics=("arbitrary",)),
    )(ids, bias, emb, pe, wqkv, wo, w1, w2, vecs)


# -------------------------------- full forward ---------------------------------
@jax.jit
def encoder_forward(params, src, src_mask):
    """src: (B, S) int32 token ids; src_mask: (B, S) {0,1} pad mask."""
    b, s = src.shape
    ids = src.astype(jnp.int32).reshape(b * s, 1)
    pe_blk = jnp.tile(params["pe"][:s], (b, 1))                          # (B*S, H)

    # additive attention bias: -1e9 on cross-batch blocks and on padded key columns
    rows = jnp.arange(b * s)
    same_batch = (rows[:, None] // s) == (rows[None, :] // s)
    key_valid = (src_mask.reshape(-1) != 0)[None, :]
    bias = jnp.where(same_batch & key_valid, 0.0, -1e9).astype(jnp.float32)

    out_flat, score_flat = _encoder_pallas(
        ids, bias, params["embedding"], pe_blk,
        params["wqkv"], params["wo"], params["w1"], params["w2"], params["vecs"])

    out = out_flat.reshape(b, s, HIDDEN)
    # (B*S, HEAD_N*B*S) -> (B, S, HEAD_N, B, S) -> take diagonal batch blocks
    sc = score_flat.reshape(b, s, HEAD_N, b, s)
    idx = jnp.arange(b)
    score = sc[idx, :, :, idx, :].transpose(0, 2, 1, 3)                  # (B, nh, S, S)
    return out, score


# ------------------------------ parameter init --------------------------------
def make_positional_encoding(max_len, hidden):
    pos = jnp.arange(max_len, dtype=jnp.float32)[:, None]
    i = jnp.arange(hidden, dtype=jnp.float32)[None, :]
    angle = pos / jnp.power(10000.0, (2.0 * jnp.floor(i / 2.0)) / hidden)
    pe = jnp.where((jnp.arange(hidden)[None, :] % 2) == 0,
                   jnp.sin(angle), jnp.cos(angle))
    return pe.astype(jnp.float32)


def init_params(key):
    def dense(k, din, dout):
        kw, kb = jax.random.split(k)
        lim = 1.0 / math.sqrt(din)
        w = jax.random.uniform(kw, (din, dout), jnp.float32, -lim, lim)
        bvec = jax.random.uniform(kb, (dout,), jnp.float32, -lim, lim)
        return w, bvec

    keys = jax.random.split(key, 1 + LAYER_N)
    emb = jax.random.normal(keys[0], (VOCAB, HIDDEN), jnp.float32)
    pe = make_positional_encoding(MAX_LEN, HIDDEN)

    wqkv_l, wo_l, w1_l, w2_l, vecs_l = [], [], [], [], []
    for l in range(LAYER_N):
        lk = jax.random.split(keys[1 + l], 6)
        wq, bq = dense(lk[0], HIDDEN, HIDDEN)
        wk, bk = dense(lk[1], HIDDEN, HIDDEN)
        wv, bv = dense(lk[2], HIDDEN, HIDDEN)
        wo, bo = dense(lk[3], HIDDEN, HIDDEN)
        w1, b1 = dense(lk[4], HIDDEN, FFN)
        w2, b2 = dense(lk[5], FFN, HIDDEN)

        wqkv_l.append(jnp.concatenate([wq, wk, wv], axis=1))       # (H, 3H)
        wo_l.append(wo)
        w1_l.append(w1)
        w2_l.append(w2)

        v = jnp.zeros((8, W3), jnp.float32)
        v = v.at[0, :].set(jnp.concatenate([bq, bk, bv]))          # fused qkv bias
        v = v.at[1, :HIDDEN].set(bo)
        v = v.at[2, :FFN].set(b1)
        v = v.at[3, :HIDDEN].set(b2)
        v = v.at[4, :HIDDEN].set(jnp.ones((HIDDEN,), jnp.float32))  # ln1 gamma
        # row 5: ln1 beta = 0, row 7: ln2 beta = 0 (already zeros)
        v = v.at[6, :HIDDEN].set(jnp.ones((HIDDEN,), jnp.float32))  # ln2 gamma
        vecs_l.append(v)

    # matmul weights stored bf16 (MXU-native); biases / LN params / PE stay f32
    return dict(
        embedding=emb.astype(jnp.bfloat16), pe=pe,
        wqkv=jnp.stack(wqkv_l).astype(jnp.bfloat16),
        wo=jnp.stack(wo_l).astype(jnp.bfloat16),
        w1=jnp.stack(w1_l).astype(jnp.bfloat16),
        w2=jnp.stack(w2_l).astype(jnp.bfloat16),
        vecs=jnp.stack(vecs_l),
    )


# --------------------------- pure-JAX reference -------------------------------
def encoder_reference(params, src, src_mask):
    emb = params["embedding"].astype(jnp.float32)
    x = jnp.take(emb, src, axis=0) + params["pe"][:src.shape[1]][None]
    neg = jnp.where(src_mask[:, None, None, :] == 0, -1e9, 0.0)    # (B,1,1,S)
    score = None
    for l in range(LAYER_N):
        vec = params["vecs"][l]
        wqkv = params["wqkv"][l].astype(jnp.float32)
        wo = params["wo"][l].astype(jnp.float32)
        w1 = params["w1"][l].astype(jnp.float32)
        w2 = params["w2"][l].astype(jnp.float32)
        qkv = x @ wqkv + vec[0, :]
        q, k, v = jnp.split(qkv, 3, axis=-1)
        to_heads = lambda t: t.reshape(B, S, HEAD_N, HD).transpose(0, 2, 1, 3)
        qh, kh, vh = to_heads(q), to_heads(k), to_heads(v)
        s = jnp.einsum("bhqd,bhkd->bhqk", qh, kh) / math.sqrt(HD) + neg
        p = jax.nn.softmax(s, axis=-1)
        score = p
        o = jnp.einsum("bhqk,bhkd->bhqd", p, vh)
        o = o.transpose(0, 2, 1, 3).reshape(B, S, HIDDEN)
        attn = o @ wo + vec[1, :HIDDEN]
        y = _layer_norm(x + attn, vec[4, :HIDDEN], vec[5, :HIDDEN])
        f = jnp.maximum(y @ w1 + vec[2, :FFN], 0.0) @ w2 + vec[3, :HIDDEN]
        x = _layer_norm(y + f, vec[6, :HIDDEN], vec[7, :HIDDEN])
    return x, score


# ------------------------------------ main -------------------------------------
if __name__ == "__main__":
    key = jax.random.PRNGKey(0)
    pkey, dkey = jax.random.split(key)
    params = init_params(pkey)

    src = jax.random.randint(dkey, (B, S), 0, VOCAB, dtype=jnp.int32)
    # pad mask: last two positions of batch element 1 are padding
    src_mask = jnp.ones((B, S), jnp.int32).at[1, -2:].set(0)

    out, score = encoder_forward(params, src, src_mask)
    out = jax.block_until_ready(out)
    score = jax.block_until_ready(score)

    ref_out, ref_score = encoder_reference(params, src, src_mask)

    assert out.shape == (B, S, HIDDEN)
    assert score.shape == (B, HEAD_N, S, S)
    assert bool(jnp.all(jnp.isfinite(out))) and bool(jnp.all(jnp.isfinite(score)))
    # bf16 MXU operands + approx reciprocal (per perf review) -> relaxed tolerance
    assert bool(jnp.allclose(out, ref_out, atol=3e-2, rtol=3e-2))
    assert bool(jnp.allclose(score, ref_score, atol=3e-2, rtol=3e-2))
    print("KERNEL_OK")
</pallas_src>

<mosaic_0001>
module attributes {stable_mosaic.version = 11 : i64} {
  func.func @encoder_kernel(%arg0: i32, %arg1: memref<16x1xi32, #tpu.memory_space<vmem>>, %arg2: memref<16x16xf32, #tpu.memory_space<vmem>>, %arg3: memref<32x32xbf16, #tpu.memory_space<vmem>>, %arg4: memref<16x32xf32, #tpu.memory_space<vmem>>, %arg5: memref<2x32x96xbf16, #tpu.memory_space<vmem>>, %arg6: memref<2x32x32xbf16, #tpu.memory_space<vmem>>, %arg7: memref<2x32x64xbf16, #tpu.memory_space<vmem>>, %arg8: memref<2x64x32xbf16, #tpu.memory_space<vmem>>, %arg9: memref<2x8x96xf32, #tpu.memory_space<vmem>>, %arg10: memref<16x32xf32, #tpu.memory_space<vmem>>, %arg11: memref<16x64xf32, #tpu.memory_space<vmem>>) attributes {dimension_semantics = [#tpu.dimension_semantics<arbitrary>], iteration_bounds = array<i64: 1>, scalar_prefetch = 0 : i64, scratch_operands = 0 : i64, tpu.core_type = #tpu.core_type<tc>, window_params = [{pipeline_mode = #tpu.pipeline_mode<synchronous>, transform_indices = @transform_0, window_bounds = array<i64: 16, 1>}, {pipeline_mode = #tpu.pipeline_mode<synchronous>, transform_indices = @transform_1, window_bounds = array<i64: 16, 16>}, {pipeline_mode = #tpu.pipeline_mode<synchronous>, transform_indices = @transform_2, window_bounds = array<i64: 32, 32>}, {pipeline_mode = #tpu.pipeline_mode<synchronous>, transform_indices = @transform_3, window_bounds = array<i64: 16, 32>}, {pipeline_mode = #tpu.pipeline_mode<synchronous>, transform_indices = @transform_4, window_bounds = array<i64: 2, 32, 96>}, {pipeline_mode = #tpu.pipeline_mode<synchronous>, transform_indices = @transform_5, window_bounds = array<i64: 2, 32, 32>}, {pipeline_mode = #tpu.pipeline_mode<synchronous>, transform_indices = @transform_6, window_bounds = array<i64: 2, 32, 64>}, {pipeline_mode = #tpu.pipeline_mode<synchronous>, transform_indices = @transform_7, window_bounds = array<i64: 2, 64, 32>}, {pipeline_mode = #tpu.pipeline_mode<synchronous>, transform_indices = @transform_8, window_bounds = array<i64: 2, 8, 96>}, {pipeline_mode = #tpu.pipeline_mode<synchronous>, transform_indices = @transform_9, window_bounds = array<i64: 16, 32>}, {pipeline_mode = #tpu.pipeline_mode<synchronous>, transform_indices = @transform_10, window_bounds = array<i64: 16, 64>}]} {
    %0 = tpu.iota {dimensions = array<i32: 1>} : vector<16x32xi32>
    %c0 = arith.constant 0 : index
    %c0_0 = arith.constant 0 : index
    %1 = vector.load %arg1[%c0, %c0_0] : memref<16x1xi32, #tpu.memory_space<vmem>>, vector<16x1xi32>
    %2 = vector.broadcast %1 : vector<16x1xi32> to vector<16x32xi32>
    %3 = arith.cmpi eq, %2, %0 : vector<16x32xi32>
    %4 = arith.extui %3 : vector<16x32xi1> to vector<16x32xi32>
    %5 = arith.sitofp %4 : vector<16x32xi32> to vector<16x32xf32>
    %6 = arith.truncf %5 : vector<16x32xf32> to vector<16x32xbf16>
    %c0_1 = arith.constant 0 : index
    %c0_2 = arith.constant 0 : index
    %7 = vector.load %arg3[%c0_1, %c0_2] : memref<32x32xbf16, #tpu.memory_space<vmem>>, vector<32x32xbf16>
    %cst = arith.constant dense<0.000000e+00> : vector<16x32xf32>
    %8 = tpu.matmul %6, %7, %cst {dimension_numbers = #tpu.dot_dimension_numbers<[1], [0], [0], [1], [0, 0, 1, 1], [], []>} : vector<16x32xbf16>, vector<32x32xbf16>, vector<16x32xf32> -> vector<16x32xf32>
    %c0_3 = arith.constant 0 : index
    %c0_4 = arith.constant 0 : index
    %9 = vector.load %arg4[%c0_3, %c0_4] : memref<16x32xf32, #tpu.memory_space<vmem>>, vector<16x32xf32>
    %10 = arith.addf %8, %9 : vector<16x32xf32>
    %c0_5 = arith.constant 0 : index
    %c0_6 = arith.constant 0 : index
    %11 = vector.load %arg2[%c0_5, %c0_6] : memref<16x16xf32, #tpu.memory_space<vmem>>, vector<16x16xf32>
    %c0_7 = arith.constant 0 : index
    %c0_8 = arith.constant 0 : index
    %c0_9 = arith.constant 0 : index
    %12 = vector.load %arg5[%c0_7, %c0_8, %c0_9] : memref<2x32x96xbf16, #tpu.memory_space<vmem>>, vector<1x32x96xbf16>
    %13 = vector.shape_cast %12 : vector<1x32x96xbf16> to vector<32x96xbf16>
    %c0_10 = arith.constant 0 : index
    %c0_11 = arith.constant 0 : index
    %c0_12 = arith.constant 0 : index
    %14 = vector.load %arg6[%c0_10, %c0_11, %c0_12] : memref<2x32x32xbf16, #tpu.memory_space<vmem>>, vector<1x32x32xbf16>
    %15 = vector.shape_cast %14 : vector<1x32x32xbf16> to vector<32x32xbf16>
    %c0_13 = arith.constant 0 : index
    %c0_14 = arith.constant 0 : index
    %c0_15 = arith.constant 0 : index
    %16 = vector.load %arg7[%c0_13, %c0_14, %c0_15] : memref<2x32x64xbf16, #tpu.memory_space<vmem>>, vector<1x32x64xbf16>
    %17 = vector.shape_cast %16 : vector<1x32x64xbf16> to vector<32x64xbf16>
    %c0_16 = arith.constant 0 : index
    %c0_17 = arith.constant 0 : index
    %c0_18 = arith.constant 0 : index
    %18 = vector.load %arg8[%c0_16, %c0_17, %c0_18] : memref<2x64x32xbf16, #tpu.memory_space<vmem>>, vector<1x64x32xbf16>
    %19 = vector.shape_cast %18 : vector<1x64x32xbf16> to vector<64x32xbf16>
    %c0_19 = arith.constant 0 : index
    %c0_20 = arith.constant 0 : index
    %c0_21 = arith.constant 0 : index
    %20 = vector.load %arg9[%c0_19, %c0_20, %c0_21] : memref<2x8x96xf32, #tpu.memory_space<vmem>>, vector<1x8x96xf32>
    %21 = vector.shape_cast %20 : vector<1x8x96xf32> to vector<8x96xf32>
    %22 = vector.extract_strided_slice %21 {offsets = [0, 0], sizes = [1, 96], strides = [1, 1]} : vector<8x96xf32> to vector<1x96xf32>
    %23 = vector.extract_strided_slice %21 {offsets = [1, 0], sizes = [1, 32], strides = [1, 1]} : vector<8x96xf32> to vector<1x32xf32>
    %24 = vector.extract_strided_slice %21 {offsets = [2, 0], sizes = [1, 64], strides = [1, 1]} : vector<8x96xf32> to vector<1x64xf32>
    %25 = vector.extract_strided_slice %21 {offsets = [3, 0], sizes = [1, 32], strides = [1, 1]} : vector<8x96xf32> to vector<1x32xf32>
    %26 = vector.extract_strided_slice %21 {offsets = [4, 0], sizes = [1, 32], strides = [1, 1]} : vector<8x96xf32> to vector<1x32xf32>
    %27 = vector.extract_strided_slice %21 {offsets = [5, 0], sizes = [1, 32], strides = [1, 1]} : vector<8x96xf32> to vector<1x32xf32>
    %28 = vector.extract_strided_slice %21 {offsets = [6, 0], sizes = [1, 32], strides = [1, 1]} : vector<8x96xf32> to vector<1x32xf32>
    %29 = vector.extract_strided_slice %21 {offsets = [7, 0], sizes = [1, 32], strides = [1, 1]} : vector<8x96xf32> to vector<1x32xf32>
    %30 = arith.truncf %10 : vector<16x32xf32> to vector<16x32xbf16>
    %cst_22 = arith.constant dense<0.000000e+00> : vector<16x96xf32>
    %31 = tpu.matmul %30, %13, %cst_22 {dimension_numbers = #tpu.dot_dimension_numbers<[1], [0], [0], [1], [0, 0, 1, 1], [], []>} : vector<16x32xbf16>, vector<32x96xbf16>, vector<16x96xf32> -> vector<16x96xf32>
    %32 = vector.broadcast %22 : vector<1x96xf32> to vector<16x96xf32>
    %33 = arith.addf %31, %32 : vector<16x96xf32>
    %34 = vector.extract_strided_slice %33 {offsets = [0, 0], sizes = [16, 8], strides = [1, 1]} : vector<16x96xf32> to vector<16x8xf32>
    %35 = vector.extract_strided_slice %33 {offsets = [0, 32], sizes = [16, 8], strides = [1, 1]} : vector<16x96xf32> to vector<16x8xf32>
    %36 = vector.extract_strided_slice %33 {offsets = [0, 64], sizes = [16, 8], strides = [1, 1]} : vector<16x96xf32> to vector<16x8xf32>
    %37 = tpu.transpose %35, [1, 0] : vector<16x8xf32> -> vector<8x16xf32>
    %cst_23 = arith.constant dense<0.000000e+00> : vector<16x16xf32>
    %38 = tpu.matmul %34, %37, %cst_23 {dimension_numbers = #tpu.dot_dimension_numbers<[1], [0], [0], [1], [0, 0, 1, 1], [], []>} : vector<16x8xf32>, vector<8x16xf32>, vector<16x16xf32> -> vector<16x16xf32>
    %cst_24 = arith.constant 0.353553385 : f32
    %39 = vector.broadcast %cst_24 : f32 to vector<16x16xf32>
    %40 = arith.mulf %38, %39 : vector<16x16xf32>
    %41 = arith.addf %40, %11 : vector<16x16xf32>
    %cst_25 = arith.constant dense<0xFF800000> : vector<16xf32>
    %42 = vector.multi_reduction <maximumf>, %41, %cst_25 [1] : vector<16x16xf32> to vector<16xf32>
    %43 = vector.shape_cast %42 : vector<16xf32> to vector<16x1xf32>
    %44 = vector.broadcast %43 : vector<16x1xf32> to vector<16x16xf32>
    %45 = arith.subf %41, %44 : vector<16x16xf32>
    %46 = math.exp %45 : vector<16x16xf32>
    %cst_26 = arith.constant dense<0.000000e+00> : vector<16xf32>
    %47 = vector.multi_reduction <add>, %46, %cst_26 [1] : vector<16x16xf32> to vector<16xf32>
    %48 = vector.shape_cast %47 : vector<16xf32> to vector<16x1xf32>
    %49 = tpu.reciprocal %48 {approx = true} : vector<16x1xf32> -> vector<16x1xf32>
    %50 = vector.broadcast %49 : vector<16x1xf32> to vector<16x16xf32>
    %51 = arith.mulf %46, %50 : vector<16x16xf32>
    %cst_27 = arith.constant dense<0.000000e+00> : vector<16x8xf32>
    %52 = tpu.matmul %51, %36, %cst_27 {dimension_numbers = #tpu.dot_dimension_numbers<[1], [0], [0], [1], [0, 0, 1, 1], [], []>} : vector<16x16xf32>, vector<16x8xf32>, vector<16x8xf32> -> vector<16x8xf32>
    %53 = vector.extract_strided_slice %33 {offsets = [0, 8], sizes = [16, 8], strides = [1, 1]} : vector<16x96xf32> to vector<16x8xf32>
    %54 = vector.extract_strided_slice %33 {offsets = [0, 40], sizes = [16, 8], strides = [1, 1]} : vector<16x96xf32> to vector<16x8xf32>
    %55 = vector.extract_strided_slice %33 {offsets = [0, 72], sizes = [16, 8], strides = [1, 1]} : vector<16x96xf32> to vector<16x8xf32>
    %56 = tpu.transpose %54, [1, 0] : vector<16x8xf32> -> vector<8x16xf32>
    %cst_28 = arith.constant dense<0.000000e+00> : vector<16x16xf32>
    %57 = tpu.matmul %53, %56, %cst_28 {dimension_numbers = #tpu.dot_dimension_numbers<[1], [0], [0], [1], [0, 0, 1, 1], [], []>} : vector<16x8xf32>, vector<8x16xf32>, vector<16x16xf32> -> vector<16x16xf32>
    %cst_29 = arith.constant 0.353553385 : f32
    %58 = vector.broadcast %cst_29 : f32 to vector<16x16xf32>
    %59 = arith.mulf %57, %58 : vector<16x16xf32>
    %60 = arith.addf %59, %11 : vector<16x16xf32>
    %cst_30 = arith.constant dense<0xFF800000> : vector<16xf32>
    %61 = vector.multi_reduction <maximumf>, %60, %cst_30 [1] : vector<16x16xf32> to vector<16xf32>
    %62 = vector.shape_cast %61 : vector<16xf32> to vector<16x1xf32>
    %63 = vector.broadcast %62 : vector<16x1xf32> to vector<16x16xf32>
    %64 = arith.subf %60, %63 : vector<16x16xf32>
    %65 = math.exp %64 : vector<16x16xf32>
    %cst_31 = arith.constant dense<0.000000e+00> : vector<16xf32>
    %66 = vector.multi_reduction <add>, %65, %cst_31 [1] : vector<16x16xf32> to vector<16xf32>
    %67 = vector.shape_cast %66 : vector<16xf32> to vector<16x1xf32>
    %68 = tpu.reciprocal %67 {approx = true} : vector<16x1xf32> -> vector<16x1xf32>
    %69 = vector.broadcast %68 : vector<16x1xf32> to vector<16x16xf32>
    %70 = arith.mulf %65, %69 : vector<16x16xf32>
    %cst_32 = arith.constant dense<0.000000e+00> : vector<16x8xf32>
    %71 = tpu.matmul %70, %55, %cst_32 {dimension_numbers = #tpu.dot_dimension_numbers<[1], [0], [0], [1], [0, 0, 1, 1], [], []>} : vector<16x16xf32>, vector<16x8xf32>, vector<16x8xf32> -> vector<16x8xf32>
    %72 = vector.extract_strided_slice %33 {offsets = [0, 16], sizes = [16, 8], strides = [1, 1]} : vector<16x96xf32> to vector<16x8xf32>
    %73 = vector.extract_strided_slice %33 {offsets = [0, 48], sizes = [16, 8], strides = [1, 1]} : vector<16x96xf32> to vector<16x8xf32>
    %74 = vector.extract_strided_slice %33 {offsets = [0, 80], sizes = [16, 8], strides = [1, 1]} : vector<16x96xf32> to vector<16x8xf32>
    %75 = tpu.transpose %73, [1, 0] : vector<16x8xf32> -> vector<8x16xf32>
    %cst_33 = arith.constant dense<0.000000e+00> : vector<16x16xf32>
    %76 = tpu.matmul %72, %75, %cst_33 {dimension_numbers = #tpu.dot_dimension_numbers<[1], [0], [0], [1], [0, 0, 1, 1], [], []>} : vector<16x8xf32>, vector<8x16xf32>, vector<16x16xf32> -> vector<16x16xf32>
    %cst_34 = arith.constant 0.353553385 : f32
    %77 = vector.broadcast %cst_34 : f32 to vector<16x16xf32>
    %78 = arith.mulf %76, %77 : vector<16x16xf32>
    %79 = arith.addf %78, %11 : vector<16x16xf32>
    %cst_35 = arith.constant dense<0xFF800000> : vector<16xf32>
    %80 = vector.multi_reduction <maximumf>, %79, %cst_35 [1] : vector<16x16xf32> to vector<16xf32>
    %81 = vector.shape_cast %80 : vector<16xf32> to vector<16x1xf32>
    %82 = vector.broadcast %81 : vector<16x1xf32> to vector<16x16xf32>
    %83 = arith.subf %79, %82 : vector<16x16xf32>
    %84 = math.exp %83 : vector<16x16xf32>
    %cst_36 = arith.constant dense<0.000000e+00> : vector<16xf32>
    %85 = vector.multi_reduction <add>, %84, %cst_36 [1] : vector<16x16xf32> to vector<16xf32>
    %86 = vector.shape_cast %85 : vector<16xf32> to vector<16x1xf32>
    %87 = tpu.reciprocal %86 {approx = true} : vector<16x1xf32> -> vector<16x1xf32>
    %88 = vector.broadcast %87 : vector<16x1xf32> to vector<16x16xf32>
    %89 = arith.mulf %84, %88 : vector<16x16xf32>
    %cst_37 = arith.constant dense<0.000000e+00> : vector<16x8xf32>
    %90 = tpu.matmul %89, %74, %cst_37 {dimension_numbers = #tpu.dot_dimension_numbers<[1], [0], [0], [1], [0, 0, 1, 1], [], []>} : vector<16x16xf32>, vector<16x8xf32>, vector<16x8xf32> -> vector<16x8xf32>
    %91 = vector.extract_strided_slice %33 {offsets = [0, 24], sizes = [16, 8], strides = [1, 1]} : vector<16x96xf32> to vector<16x8xf32>
    %92 = vector.extract_strided_slice %33 {offsets = [0, 56], sizes = [16, 8], strides = [1, 1]} : vector<16x96xf32> to vector<16x8xf32>
    %93 = vector.extract_strided_slice %33 {offsets = [0, 88], sizes = [16, 8], strides = [1, 1]} : vector<16x96xf32> to vector<16x8xf32>
    %94 = tpu.transpose %92, [1, 0] : vector<16x8xf32> -> vector<8x16xf32>
    %cst_38 = arith.constant dense<0.000000e+00> : vector<16x16xf32>
    %95 = tpu.matmul %91, %94, %cst_38 {dimension_numbers = #tpu.dot_dimension_numbers<[1], [0], [0], [1], [0, 0, 1, 1], [], []>} : vector<16x8xf32>, vector<8x16xf32>, vector<16x16xf32> -> vector<16x16xf32>
    %cst_39 = arith.constant 0.353553385 : f32
    %96 = vector.broadcast %cst_39 : f32 to vector<16x16xf32>
    %97 = arith.mulf %95, %96 : vector<16x16xf32>
    %98 = arith.addf %97, %11 : vector<16x16xf32>
    %cst_40 = arith.constant dense<0xFF800000> : vector<16xf32>
    %99 = vector.multi_reduction <maximumf>, %98, %cst_40 [1] : vector<16x16xf32> to vector<16xf32>
    %100 = vector.shape_cast %99 : vector<16xf32> to vector<16x1xf32>
    %101 = vector.broadcast %100 : vector<16x1xf32> to vector<16x16xf32>
    %102 = arith.subf %98, %101 : vector<16x16xf32>
    %103 = math.exp %102 : vector<16x16xf32>
    %cst_41 = arith.constant dense<0.000000e+00> : vector<16xf32>
    %104 = vector.multi_reduction <add>, %103, %cst_41 [1] : vector<16x16xf32> to vector<16xf32>
    %105 = vector.shape_cast %104 : vector<16xf32> to vector<16x1xf32>
    %106 = tpu.reciprocal %105 {approx = true} : vector<16x1xf32> -> vector<16x1xf32>
    %107 = vector.broadcast %106 : vector<16x1xf32> to vector<16x16xf32>
    %108 = arith.mulf %103, %107 : vector<16x16xf32>
    %cst_42 = arith.constant dense<0.000000e+00> : vector<16x8xf32>
    %109 = tpu.matmul %108, %93, %cst_42 {dimension_numbers = #tpu.dot_dimension_numbers<[1], [0], [0], [1], [0, 0, 1, 1], [], []>} : vector<16x16xf32>, vector<16x8xf32>, vector<16x8xf32> -> vector<16x8xf32>
    %110 = tpu.concatenate %52, %71, %90, %109 in 1 : vector<16x8xf32>, vector<16x8xf32>, vector<16x8xf32>, vector<16x8xf32> -> vector<16x32xf32>
    %111 = arith.truncf %110 : vector<16x32xf32> to vector<16x32xbf16>
    %cst_43 = arith.constant dense<0.000000e+00> : vector<16x32xf32>
    %112 = tpu.matmul %111, %15, %cst_43 {dimension_numbers = #tpu.dot_dimension_numbers<[1], [0], [0], [1], [0, 0, 1, 1], [], []>} : vector<16x32xbf16>, vector<32x32xbf16>, vector<16x32xf32> -> vector<16x32xf32>
    %113 = vector.broadcast %23 : vector<1x32xf32> to vector<16x32xf32>
    %114 = arith.addf %112, %113 : vector<16x32xf32>
    %115 = arith.addf %10, %114 : vector<16x32xf32>
    %cst_44 = arith.constant dense<0.000000e+00> : vector<16xf32>
    %116 = vector.multi_reduction <add>, %115, %cst_44 [1] : vector<16x32xf32> to vector<16xf32>
    %117 = vector.shape_cast %116 : vector<16xf32> to vector<16x1xf32>
    %cst_45 = arith.constant 3.200000e+01 : f32
    %118 = vector.broadcast %cst_45 : f32 to vector<16x1xf32>
    %119 = arith.divf %117, %118 : vector<16x1xf32>
    %120 = vector.broadcast %119 : vector<16x1xf32> to vector<16x32xf32>
    %121 = arith.subf %115, %120 : vector<16x32xf32>
    %122 = arith.mulf %121, %121 : vector<16x32xf32>
    %cst_46 = arith.constant dense<0.000000e+00> : vector<16xf32>
    %123 = vector.multi_reduction <add>, %122, %cst_46 [1] : vector<16x32xf32> to vector<16xf32>
    %124 = vector.shape_cast %123 : vector<16xf32> to vector<16x1xf32>
    %cst_47 = arith.constant 3.200000e+01 : f32
    %125 = vector.broadcast %cst_47 : f32 to vector<16x1xf32>
    %126 = arith.divf %124, %125 : vector<16x1xf32>
    %127 = vector.broadcast %119 : vector<16x1xf32> to vector<16x32xf32>
    %128 = arith.subf %115, %127 : vector<16x32xf32>
    %cst_48 = arith.constant 9.99999974E-6 : f32
    %129 = vector.broadcast %cst_48 : f32 to vector<16x1xf32>
    %130 = arith.addf %126, %129 : vector<16x1xf32>
    %131 = math.rsqrt %130 : vector<16x1xf32>
    %132 = vector.broadcast %131 : vector<16x1xf32> to vector<16x32xf32>
    %133 = arith.mulf %128, %132 : vector<16x32xf32>
    %134 = vector.broadcast %26 : vector<1x32xf32> to vector<16x32xf32>
    %135 = arith.mulf %133, %134 : vector<16x32xf32>
    %136 = vector.broadcast %27 : vector<1x32xf32> to vector<16x32xf32>
    %137 = arith.addf %135, %136 : vector<16x32xf32>
    %138 = arith.truncf %137 : vector<16x32xf32> to vector<16x32xbf16>
    %cst_49 = arith.constant dense<0.000000e+00> : vector<16x64xf32>
    %139 = tpu.matmul %138, %17, %cst_49 {dimension_numbers = #tpu.dot_dimension_numbers<[1], [0], [0], [1], [0, 0, 1, 1], [], []>} : vector<16x32xbf16>, vector<32x64xbf16>, vector<16x64xf32> -> vector<16x64xf32>
    %140 = vector.broadcast %24 : vector<1x64xf32> to vector<16x64xf32>
    %141 = arith.addf %139, %140 : vector<16x64xf32>
    %cst_50 = arith.constant 0.000000e+00 : f32
    %142 = vector.broadcast %cst_50 : f32 to vector<16x64xf32>
    %143 = arith.maximumf %141, %142 : vector<16x64xf32>
    %144 = arith.truncf %143 : vector<16x64xf32> to vector<16x64xbf16>
    %cst_51 = arith.constant dense<0.000000e+00> : vector<16x32xf32>
    %145 = tpu.matmul %144, %19, %cst_51 {dimension_numbers = #tpu.dot_dimension_numbers<[1], [0], [0], [1], [0, 0, 1, 1], [], []>} : vector<16x64xbf16>, vector<64x32xbf16>, vector<16x32xf32> -> vector<16x32xf32>
    %146 = vector.broadcast %25 : vector<1x32xf32> to vector<16x32xf32>
    %147 = arith.addf %145, %146 : vector<16x32xf32>
    %148 = arith.addf %137, %147 : vector<16x32xf32>
    %cst_52 = arith.constant dense<0.000000e+00> : vector<16xf32>
    %149 = vector.multi_reduction <add>, %148, %cst_52 [1] : vector<16x32xf32> to vector<16xf32>
    %150 = vector.shape_cast %149 : vector<16xf32> to vector<16x1xf32>
    %cst_53 = arith.constant 3.200000e+01 : f32
    %151 = vector.broadcast %cst_53 : f32 to vector<16x1xf32>
    %152 = arith.divf %150, %151 : vector<16x1xf32>
    %153 = vector.broadcast %152 : vector<16x1xf32> to vector<16x32xf32>
    %154 = arith.subf %148, %153 : vector<16x32xf32>
    %155 = arith.mulf %154, %154 : vector<16x32xf32>
    %cst_54 = arith.constant dense<0.000000e+00> : vector<16xf32>
    %156 = vector.multi_reduction <add>, %155, %cst_54 [1] : vector<16x32xf32> to vector<16xf32>
    %157 = vector.shape_cast %156 : vector<16xf32> to vector<16x1xf32>
    %cst_55 = arith.constant 3.200000e+01 : f32
    %158 = vector.broadcast %cst_55 : f32 to vector<16x1xf32>
    %159 = arith.divf %157, %158 : vector<16x1xf32>
    %160 = vector.broadcast %152 : vector<16x1xf32> to vector<16x32xf32>
    %161 = arith.subf %148, %160 : vector<16x32xf32>
    %cst_56 = arith.constant 9.99999974E-6 : f32
    %162 = vector.broadcast %cst_56 : f32 to vector<16x1xf32>
    %163 = arith.addf %159, %162 : vector<16x1xf32>
    %164 = math.rsqrt %163 : vector<16x1xf32>
    %165 = vector.broadcast %164 : vector<16x1xf32> to vector<16x32xf32>
    %166 = arith.mulf %161, %165 : vector<16x32xf32>
    %167 = vector.broadcast %28 : vector<1x32xf32> to vector<16x32xf32>
    %168 = arith.mulf %166, %167 : vector<16x32xf32>
    %169 = vector.broadcast %29 : vector<1x32xf32> to vector<16x32xf32>
    %170 = arith.addf %168, %169 : vector<16x32xf32>
    %c1 = arith.constant 1 : index
    %c0_57 = arith.constant 0 : index
    %c0_58 = arith.constant 0 : index
    %171 = vector.load %arg5[%c1, %c0_57, %c0_58] : memref<2x32x96xbf16, #tpu.memory_space<vmem>>, vector<1x32x96xbf16>
    %172 = vector.shape_cast %171 : vector<1x32x96xbf16> to vector<32x96xbf16>
    %c1_59 = arith.constant 1 : index
    %c0_60 = arith.constant 0 : index
    %c0_61 = arith.constant 0 : index
    %173 = vector.load %arg6[%c1_59, %c0_60, %c0_61] : memref<2x32x32xbf16, #tpu.memory_space<vmem>>, vector<1x32x32xbf16>
    %174 = vector.shape_cast %173 : vector<1x32x32xbf16> to vector<32x32xbf16>
    %c1_62 = arith.constant 1 : index
    %c0_63 = arith.constant 0 : index
    %c0_64 = arith.constant 0 : index
    %175 = vector.load %arg7[%c1_62, %c0_63, %c0_64] : memref<2x32x64xbf16, #tpu.memory_space<vmem>>, vector<1x32x64xbf16>
    %176 = vector.shape_cast %175 : vector<1x32x64xbf16> to vector<32x64xbf16>
    %c1_65 = arith.constant 1 : index
    %c0_66 = arith.constant 0 : index
    %c0_67 = arith.constant 0 : index
    %177 = vector.load %arg8[%c1_65, %c0_66, %c0_67] : memref<2x64x32xbf16, #tpu.memory_space<vmem>>, vector<1x64x32xbf16>
    %178 = vector.shape_cast %177 : vector<1x64x32xbf16> to vector<64x32xbf16>
    %c1_68 = arith.constant 1 : index
    %c0_69 = arith.constant 0 : index
    %c0_70 = arith.constant 0 : index
    %179 = vector.load %arg9[%c1_68, %c0_69, %c0_70] : memref<2x8x96xf32, #tpu.memory_space<vmem>>, vector<1x8x96xf32>
    %180 = vector.shape_cast %179 : vector<1x8x96xf32> to vector<8x96xf32>
    %181 = vector.extract_strided_slice %180 {offsets = [0, 0], sizes = [1, 96], strides = [1, 1]} : vector<8x96xf32> to vector<1x96xf32>
    %182 = vector.extract_strided_slice %180 {offsets = [1, 0], sizes = [1, 32], strides = [1, 1]} : vector<8x96xf32> to vector<1x32xf32>
    %183 = vector.extract_strided_slice %180 {offsets = [2, 0], sizes = [1, 64], strides = [1, 1]} : vector<8x96xf32> to vector<1x64xf32>
    %184 = vector.extract_strided_slice %180 {offsets = [3, 0], sizes = [1, 32], strides = [1, 1]} : vector<8x96xf32> to vector<1x32xf32>
    %185 = vector.extract_strided_slice %180 {offsets = [4, 0], sizes = [1, 32], strides = [1, 1]} : vector<8x96xf32> to vector<1x32xf32>
    %186 = vector.extract_strided_slice %180 {offsets = [5, 0], sizes = [1, 32], strides = [1, 1]} : vector<8x96xf32> to vector<1x32xf32>
    %187 = vector.extract_strided_slice %180 {offsets = [6, 0], sizes = [1, 32], strides = [1, 1]} : vector<8x96xf32> to vector<1x32xf32>
    %188 = vector.extract_strided_slice %180 {offsets = [7, 0], sizes = [1, 32], strides = [1, 1]} : vector<8x96xf32> to vector<1x32xf32>
    %189 = arith.truncf %170 : vector<16x32xf32> to vector<16x32xbf16>
    %cst_71 = arith.constant dense<0.000000e+00> : vector<16x96xf32>
    %190 = tpu.matmul %189, %172, %cst_71 {dimension_numbers = #tpu.dot_dimension_numbers<[1], [0], [0], [1], [0, 0, 1, 1], [], []>} : vector<16x32xbf16>, vector<32x96xbf16>, vector<16x96xf32> -> vector<16x96xf32>
    %191 = vector.broadcast %181 : vector<1x96xf32> to vector<16x96xf32>
    %192 = arith.addf %190, %191 : vector<16x96xf32>
    %193 = vector.extract_strided_slice %192 {offsets = [0, 0], sizes = [16, 8], strides = [1, 1]} : vector<16x96xf32> to vector<16x8xf32>
    %194 = vector.extract_strided_slice %192 {offsets = [0, 32], sizes = [16, 8], strides = [1, 1]} : vector<16x96xf32> to vector<16x8xf32>
    %195 = vector.extract_strided_slice %192 {offsets = [0, 64], sizes = [16, 8], strides = [1, 1]} : vector<16x96xf32> to vector<16x8xf32>
    %196 = tpu.transpose %194, [1, 0] : vector<16x8xf32> -> vector<8x16xf32>
    %cst_72 = arith.constant dense<0.000000e+00> : vector<16x16xf32>
    %197 = tpu.matmul %193, %196, %cst_72 {dimension_numbers = #tpu.dot_dimension_numbers<[1], [0], [0], [1], [0, 0, 1, 1], [], []>} : vector<16x8xf32>, vector<8x16xf32>, vector<16x16xf32> -> vector<16x16xf32>
    %cst_73 = arith.constant 0.353553385 : f32
    %198 = vector.broadcast %cst_73 : f32 to vector<16x16xf32>
    %199 = arith.mulf %197, %198 : vector<16x16xf32>
    %200 = arith.addf %199, %11 : vector<16x16xf32>
    %cst_74 = arith.constant dense<0xFF800000> : vector<16xf32>
    %201 = vector.multi_reduction <maximumf>, %200, %cst_74 [1] : vector<16x16xf32> to vector<16xf32>
    %202 = vector.shape_cast %201 : vector<16xf32> to vector<16x1xf32>
    %203 = vector.broadcast %202 : vector<16x1xf32> to vector<16x16xf32>
    %204 = arith.subf %200, %203 : vector<16x16xf32>
    %205 = math.exp %204 : vector<16x16xf32>
    %cst_75 = arith.constant dense<0.000000e+00> : vector<16xf32>
    %206 = vector.multi_reduction <add>, %205, %cst_75 [1] : vector<16x16xf32> to vector<16xf32>
    %207 = vector.shape_cast %206 : vector<16xf32> to vector<16x1xf32>
    %208 = tpu.reciprocal %207 {approx = true} : vector<16x1xf32> -> vector<16x1xf32>
    %209 = vector.broadcast %208 : vector<16x1xf32> to vector<16x16xf32>
    %210 = arith.mulf %205, %209 : vector<16x16xf32>
    %cst_76 = arith.constant dense<0.000000e+00> : vector<16x8xf32>
    %211 = tpu.matmul %210, %195, %cst_76 {dimension_numbers = #tpu.dot_dimension_numbers<[1], [0], [0], [1], [0, 0, 1, 1], [], []>} : vector<16x16xf32>, vector<16x8xf32>, vector<16x8xf32> -> vector<16x8xf32>
    %212 = vector.extract_strided_slice %192 {offsets = [0, 8], sizes = [16, 8], strides = [1, 1]} : vector<16x96xf32> to vector<16x8xf32>
    %213 = vector.extract_strided_slice %192 {offsets = [0, 40], sizes = [16, 8], strides = [1, 1]} : vector<16x96xf32> to vector<16x8xf32>
    %214 = vector.extract_strided_slice %192 {offsets = [0, 72], sizes = [16, 8], strides = [1, 1]} : vector<16x96xf32> to vector<16x8xf32>
    %215 = tpu.transpose %213, [1, 0] : vector<16x8xf32> -> vector<8x16xf32>
    %cst_77 = arith.constant dense<0.000000e+00> : vector<16x16xf32>
    %216 = tpu.matmul %212, %215, %cst_77 {dimension_numbers = #tpu.dot_dimension_numbers<[1], [0], [0], [1], [0, 0, 1, 1], [], []>} : vector<16x8xf32>, vector<8x16xf32>, vector<16x16xf32> -> vector<16x16xf32>
    %cst_78 = arith.constant 0.353553385 : f32
    %217 = vector.broadcast %cst_78 : f32 to vector<16x16xf32>
    %218 = arith.mulf %216, %217 : vector<16x16xf32>
    %219 = arith.addf %218, %11 : vector<16x16xf32>
    %cst_79 = arith.constant dense<0xFF800000> : vector<16xf32>
    %220 = vector.multi_reduction <maximumf>, %219, %cst_79 [1] : vector<16x16xf32> to vector<16xf32>
    %221 = vector.shape_cast %220 : vector<16xf32> to vector<16x1xf32>
    %222 = vector.broadcast %221 : vector<16x1xf32> to vector<16x16xf32>
    %223 = arith.subf %219, %222 : vector<16x16xf32>
    %224 = math.exp %223 : vector<16x16xf32>
    %cst_80 = arith.constant dense<0.000000e+00> : vector<16xf32>
    %225 = vector.multi_reduction <add>, %224, %cst_80 [1] : vector<16x16xf32> to vector<16xf32>
    %226 = vector.shape_cast %225 : vector<16xf32> to vector<16x1xf32>
    %227 = tpu.reciprocal %226 {approx = true} : vector<16x1xf32> -> vector<16x1xf32>
    %228 = vector.broadcast %227 : vector<16x1xf32> to vector<16x16xf32>
    %229 = arith.mulf %224, %228 : vector<16x16xf32>
    %cst_81 = arith.constant dense<0.000000e+00> : vector<16x8xf32>
    %230 = tpu.matmul %229, %214, %cst_81 {dimension_numbers = #tpu.dot_dimension_numbers<[1], [0], [0], [1], [0, 0, 1, 1], [], []>} : vector<16x16xf32>, vector<16x8xf32>, vector<16x8xf32> -> vector<16x8xf32>
    %231 = vector.extract_strided_slice %192 {offsets = [0, 16], sizes = [16, 8], strides = [1, 1]} : vector<16x96xf32> to vector<16x8xf32>
    %232 = vector.extract_strided_slice %192 {offsets = [0, 48], sizes = [16, 8], strides = [1, 1]} : vector<16x96xf32> to vector<16x8xf32>
    %233 = vector.extract_strided_slice %192 {offsets = [0, 80], sizes = [16, 8], strides = [1, 1]} : vector<16x96xf32> to vector<16x8xf32>
    %234 = tpu.transpose %232, [1, 0] : vector<16x8xf32> -> vector<8x16xf32>
    %cst_82 = arith.constant dense<0.000000e+00> : vector<16x16xf32>
    %235 = tpu.matmul %231, %234, %cst_82 {dimension_numbers = #tpu.dot_dimension_numbers<[1], [0], [0], [1], [0, 0, 1, 1], [], []>} : vector<16x8xf32>, vector<8x16xf32>, vector<16x16xf32> -> vector<16x16xf32>
    %cst_83 = arith.constant 0.353553385 : f32
    %236 = vector.broadcast %cst_83 : f32 to vector<16x16xf32>
    %237 = arith.mulf %235, %236 : vector<16x16xf32>
    %238 = arith.addf %237, %11 : vector<16x16xf32>
    %cst_84 = arith.constant dense<0xFF800000> : vector<16xf32>
    %239 = vector.multi_reduction <maximumf>, %238, %cst_84 [1] : vector<16x16xf32> to vector<16xf32>
    %240 = vector.shape_cast %239 : vector<16xf32> to vector<16x1xf32>
    %241 = vector.broadcast %240 : vector<16x1xf32> to vector<16x16xf32>
    %242 = arith.subf %238, %241 : vector<16x16xf32>
    %243 = math.exp %242 : vector<16x16xf32>
    %cst_85 = arith.constant dense<0.000000e+00> : vector<16xf32>
    %244 = vector.multi_reduction <add>, %243, %cst_85 [1] : vector<16x16xf32> to vector<16xf32>
    %245 = vector.shape_cast %244 : vector<16xf32> to vector<16x1xf32>
    %246 = tpu.reciprocal %245 {approx = true} : vector<16x1xf32> -> vector<16x1xf32>
    %247 = vector.broadcast %246 : vector<16x1xf32> to vector<16x16xf32>
    %248 = arith.mulf %243, %247 : vector<16x16xf32>
    %cst_86 = arith.constant dense<0.000000e+00> : vector<16x8xf32>
    %249 = tpu.matmul %248, %233, %cst_86 {dimension_numbers = #tpu.dot_dimension_numbers<[1], [0], [0], [1], [0, 0, 1, 1], [], []>} : vector<16x16xf32>, vector<16x8xf32>, vector<16x8xf32> -> vector<16x8xf32>
    %250 = vector.extract_strided_slice %192 {offsets = [0, 24], sizes = [16, 8], strides = [1, 1]} : vector<16x96xf32> to vector<16x8xf32>
    %251 = vector.extract_strided_slice %192 {offsets = [0, 56], sizes = [16, 8], strides = [1, 1]} : vector<16x96xf32> to vector<16x8xf32>
    %252 = vector.extract_strided_slice %192 {offsets = [0, 88], sizes = [16, 8], strides = [1, 1]} : vector<16x96xf32> to vector<16x8xf32>
    %253 = tpu.transpose %251, [1, 0] : vector<16x8xf32> -> vector<8x16xf32>
    %cst_87 = arith.constant dense<0.000000e+00> : vector<16x16xf32>
    %254 = tpu.matmul %250, %253, %cst_87 {dimension_numbers = #tpu.dot_dimension_numbers<[1], [0], [0], [1], [0, 0, 1, 1], [], []>} : vector<16x8xf32>, vector<8x16xf32>, vector<16x16xf32> -> vector<16x16xf32>
    %cst_88 = arith.constant 0.353553385 : f32
    %255 = vector.broadcast %cst_88 : f32 to vector<16x16xf32>
    %256 = arith.mulf %254, %255 : vector<16x16xf32>
    %257 = arith.addf %256, %11 : vector<16x16xf32>
    %cst_89 = arith.constant dense<0xFF800000> : vector<16xf32>
    %258 = vector.multi_reduction <maximumf>, %257, %cst_89 [1] : vector<16x16xf32> to vector<16xf32>
    %259 = vector.shape_cast %258 : vector<16xf32> to vector<16x1xf32>
    %260 = vector.broadcast %259 : vector<16x1xf32> to vector<16x16xf32>
    %261 = arith.subf %257, %260 : vector<16x16xf32>
    %262 = math.exp %261 : vector<16x16xf32>
    %cst_90 = arith.constant dense<0.000000e+00> : vector<16xf32>
    %263 = vector.multi_reduction <add>, %262, %cst_90 [1] : vector<16x16xf32> to vector<16xf32>
    %264 = vector.shape_cast %263 : vector<16xf32> to vector<16x1xf32>
    %265 = tpu.reciprocal %264 {approx = true} : vector<16x1xf32> -> vector<16x1xf32>
    %266 = vector.broadcast %265 : vector<16x1xf32> to vector<16x16xf32>
    %267 = arith.mulf %262, %266 : vector<16x16xf32>
    %cst_91 = arith.constant dense<0.000000e+00> : vector<16x8xf32>
    %268 = tpu.matmul %267, %252, %cst_91 {dimension_numbers = #tpu.dot_dimension_numbers<[1], [0], [0], [1], [0, 0, 1, 1], [], []>} : vector<16x16xf32>, vector<16x8xf32>, vector<16x8xf32> -> vector<16x8xf32>
    %269 = tpu.concatenate %211, %230, %249, %268 in 1 : vector<16x8xf32>, vector<16x8xf32>, vector<16x8xf32>, vector<16x8xf32> -> vector<16x32xf32>
    %270 = arith.truncf %269 : vector<16x32xf32> to vector<16x32xbf16>
    %cst_92 = arith.constant dense<0.000000e+00> : vector<16x32xf32>
    %271 = tpu.matmul %270, %174, %cst_92 {dimension_numbers = #tpu.dot_dimension_numbers<[1], [0], [0], [1], [0, 0, 1, 1], [], []>} : vector<16x32xbf16>, vector<32x32xbf16>, vector<16x32xf32> -> vector<16x32xf32>
    %272 = vector.broadcast %182 : vector<1x32xf32> to vector<16x32xf32>
    %273 = arith.addf %271, %272 : vector<16x32xf32>
    %274 = arith.addf %170, %273 : vector<16x32xf32>
    %cst_93 = arith.constant dense<0.000000e+00> : vector<16xf32>
    %275 = vector.multi_reduction <add>, %274, %cst_93 [1] : vector<16x32xf32> to vector<16xf32>
    %276 = vector.shape_cast %275 : vector<16xf32> to vector<16x1xf32>
    %cst_94 = arith.constant 3.200000e+01 : f32
    %277 = vector.broadcast %cst_94 : f32 to vector<16x1xf32>
    %278 = arith.divf %276, %277 : vector<16x1xf32>
    %279 = vector.broadcast %278 : vector<16x1xf32> to vector<16x32xf32>
    %280 = arith.subf %274, %279 : vector<16x32xf32>
    %281 = arith.mulf %280, %280 : vector<16x32xf32>
    %cst_95 = arith.constant dense<0.000000e+00> : vector<16xf32>
    %282 = vector.multi_reduction <add>, %281, %cst_95 [1] : vector<16x32xf32> to vector<16xf32>
    %283 = vector.shape_cast %282 : vector<16xf32> to vector<16x1xf32>
    %cst_96 = arith.constant 3.200000e+01 : f32
    %284 = vector.broadcast %cst_96 : f32 to vector<16x1xf32>
    %285 = arith.divf %283, %284 : vector<16x1xf32>
    %286 = vector.broadcast %278 : vector<16x1xf32> to vector<16x32xf32>
    %287 = arith.subf %274, %286 : vector<16x32xf32>
    %cst_97 = arith.constant 9.99999974E-6 : f32
    %288 = vector.broadcast %cst_97 : f32 to vector<16x1xf32>
    %289 = arith.addf %285, %288 : vector<16x1xf32>
    %290 = math.rsqrt %289 : vector<16x1xf32>
    %291 = vector.broadcast %290 : vector<16x1xf32> to vector<16x32xf32>
    %292 = arith.mulf %287, %291 : vector<16x32xf32>
    %293 = vector.broadcast %185 : vector<1x32xf32> to vector<16x32xf32>
    %294 = arith.mulf %292, %293 : vector<16x32xf32>
    %295 = vector.broadcast %186 : vector<1x32xf32> to vector<16x32xf32>
    %296 = arith.addf %294, %295 : vector<16x32xf32>
    %297 = arith.truncf %296 : vector<16x32xf32> to vector<16x32xbf16>
    %cst_98 = arith.constant dense<0.000000e+00> : vector<16x64xf32>
    %298 = tpu.matmul %297, %176, %cst_98 {dimension_numbers = #tpu.dot_dimension_numbers<[1], [0], [0], [1], [0, 0, 1, 1], [], []>} : vector<16x32xbf16>, vector<32x64xbf16>, vector<16x64xf32> -> vector<16x64xf32>
    %299 = vector.broadcast %183 : vector<1x64xf32> to vector<16x64xf32>
    %300 = arith.addf %298, %299 : vector<16x64xf32>
    %cst_99 = arith.constant 0.000000e+00 : f32
    %301 = vector.broadcast %cst_99 : f32 to vector<16x64xf32>
    %302 = arith.maximumf %300, %301 : vector<16x64xf32>
    %303 = arith.truncf %302 : vector<16x64xf32> to vector<16x64xbf16>
    %cst_100 = arith.constant dense<0.000000e+00> : vector<16x32xf32>
    %304 = tpu.matmul %303, %178, %cst_100 {dimension_numbers = #tpu.dot_dimension_numbers<[1], [0], [0], [1], [0, 0, 1, 1], [], []>} : vector<16x64xbf16>, vector<64x32xbf16>, vector<16x32xf32> -> vector<16x32xf32>
    %305 = vector.broadcast %184 : vector<1x32xf32> to vector<16x32xf32>
    %306 = arith.addf %304, %305 : vector<16x32xf32>
    %307 = arith.addf %296, %306 : vector<16x32xf32>
    %cst_101 = arith.constant dense<0.000000e+00> : vector<16xf32>
    %308 = vector.multi_reduction <add>, %307, %cst_101 [1] : vector<16x32xf32> to vector<16xf32>
    %309 = vector.shape_cast %308 : vector<16xf32> to vector<16x1xf32>
    %cst_102 = arith.constant 3.200000e+01 : f32
    %310 = vector.broadcast %cst_102 : f32 to vector<16x1xf32>
    %311 = arith.divf %309, %310 : vector<16x1xf32>
    %312 = vector.broadcast %311 : vector<16x1xf32> to vector<16x32xf32>
    %313 = arith.subf %307, %312 : vector<16x32xf32>
    %314 = arith.mulf %313, %313 : vector<16x32xf32>
    %cst_103 = arith.constant dense<0.000000e+00> : vector<16xf32>
    %315 = vector.multi_reduction <add>, %314, %cst_103 [1] : vector<16x32xf32> to vector<16xf32>
    %316 = vector.shape_cast %315 : vector<16xf32> to vector<16x1xf32>
    %cst_104 = arith.constant 3.200000e+01 : f32
    %317 = vector.broadcast %cst_104 : f32 to vector<16x1xf32>
    %318 = arith.divf %316, %317 : vector<16x1xf32>
    %319 = vector.broadcast %311 : vector<16x1xf32> to vector<16x32xf32>
    %320 = arith.subf %307, %319 : vector<16x32xf32>
    %cst_105 = arith.constant 9.99999974E-6 : f32
    %321 = vector.broadcast %cst_105 : f32 to vector<16x1xf32>
    %322 = arith.addf %318, %321 : vector<16x1xf32>
    %323 = math.rsqrt %322 : vector<16x1xf32>
    %324 = vector.broadcast %323 : vector<16x1xf32> to vector<16x32xf32>
    %325 = arith.mulf %320, %324 : vector<16x32xf32>
    %326 = vector.broadcast %187 : vector<1x32xf32> to vector<16x32xf32>
    %327 = arith.mulf %325, %326 : vector<16x32xf32>
    %328 = vector.broadcast %188 : vector<1x32xf32> to vector<16x32xf32>
    %329 = arith.addf %327, %328 : vector<16x32xf32>
    %330 = tpu.concatenate %210, %229, %248, %267 in 1 : vector<16x16xf32>, vector<16x16xf32>, vector<16x16xf32>, vector<16x16xf32> -> vector<16x64xf32>
    %c0_106 = arith.constant 0 : index
    %c0_107 = arith.constant 0 : index
    %331 = vector.load %arg11[%c0_106, %c0_107] : memref<16x64xf32, #tpu.memory_space<vmem>>, vector<16x64xf32>
    tpu.vector_store %arg11[%c0_106, %c0_107], %330 {strides = array<i32>} : memref<16x64xf32, #tpu.memory_space<vmem>>, vector<16x64xf32>,
    %c0_108 = arith.constant 0 : index
    %c0_109 = arith.constant 0 : index
    %332 = vector.load %arg10[%c0_108, %c0_109] : memref<16x32xf32, #tpu.memory_space<vmem>>, vector<16x32xf32>
    tpu.vector_store %arg10[%c0_108, %c0_109], %329 {strides = array<i32>} : memref<16x32xf32, #tpu.memory_space<vmem>>, vector<16x32xf32>,
    return
  }
  func.func @transform_0(%arg0: i32) -> (i32, i32) {
    %c0_i32 = arith.constant 0 : i32
    %c0_i32_0 = arith.constant 0 : i32
    %c0_i32_1 = arith.constant 0 : i32
    return %c0_i32, %c0_i32_0 : i32, i32
  }
  func.func @transform_1(%arg0: i32) -> (i32, i32) {
    %c0_i32 = arith.constant 0 : i32
    %c0_i32_0 = arith.constant 0 : i32
    %c0_i32_1 = arith.constant 0 : i32
    return %c0_i32, %c0_i32_0 : i32, i32
  }
  func.func @transform_2(%arg0: i32) -> (i32, i32) {
    %c0_i32 = arith.constant 0 : i32
    %c0_i32_0 = arith.constant 0 : i32
    %c0_i32_1 = arith.constant 0 : i32
    return %c0_i32, %c0_i32_0 : i32, i32
  }
  func.func @transform_3(%arg0: i32) -> (i32, i32) {
    %c0_i32 = arith.constant 0 : i32
    %c0_i32_0 = arith.constant 0 : i32
    %c0_i32_1 = arith.constant 0 : i32
    return %c0_i32, %c0_i32_0 : i32, i32
  }
  func.func @transform_4(%arg0: i32) -> (i32, i32, i32) {
    %c0_i32 = arith.constant 0 : i32
    %c0_i32_0 = arith.constant 0 : i32
    %c0_i32_1 = arith.constant 0 : i32
    %c0_i32_2 = arith.constant 0 : i32
    return %c0_i32, %c0_i32_0, %c0_i32_1 : i32, i32, i32
  }
  func.func @transform_5(%arg0: i32) -> (i32, i32, i32) {
    %c0_i32 = arith.constant 0 : i32
    %c0_i32_0 = arith.constant 0 : i32
    %c0_i32_1 = arith.constant 0 : i32
    %c0_i32_2 = arith.constant 0 : i32
    return %c0_i32, %c0_i32_0, %c0_i32_1 : i32, i32, i32
  }
  func.func @transform_6(%arg0: i32) -> (i32, i32, i32) {
    %c0_i32 = arith.constant 0 : i32
    %c0_i32_0 = arith.constant 0 : i32
    %c0_i32_1 = arith.constant 0 : i32
    %c0_i32_2 = arith.constant 0 : i32
    return %c0_i32, %c0_i32_0, %c0_i32_1 : i32, i32, i32
  }
  func.func @transform_7(%arg0: i32) -> (i32, i32, i32) {
    %c0_i32 = arith.constant 0 : i32
    %c0_i32_0 = arith.constant 0 : i32
    %c0_i32_1 = arith.constant 0 : i32
    %c0_i32_2 = arith.constant 0 : i32
    return %c0_i32, %c0_i32_0, %c0_i32_1 : i32, i32, i32
  }
  func.func @transform_8(%arg0: i32) -> (i32, i32, i32) {
    %c0_i32 = arith.constant 0 : i32
    %c0_i32_0 = arith.constant 0 : i32
    %c0_i32_1 = arith.constant 0 : i32
    %c0_i32_2 = arith.constant 0 : i32
    return %c0_i32, %c0_i32_0, %c0_i32_1 : i32, i32, i32
  }
  func.func @transform_9(%arg0: i32) -> (i32, i32) {
    %c0_i32 = arith.constant 0 : i32
    %c0_i32_0 = arith.constant 0 : i32
    %c0_i32_1 = arith.constant 0 : i32
    return %c0_i32, %c0_i32_0 : i32, i32
  }
  func.func @transform_10(%arg0: i32) -> (i32, i32) {
    %c0_i32 = arith.constant 0 : i32
    %c0_i32_0 = arith.constant 0 : i32
    %c0_i32_1 = arith.constant 0 : i32
    return %c0_i32, %c0_i32_0 : i32, i32
  }
}

</mosaic_0001>

<bundles_post_ra>
// kernel: encoder_forward.1
= control target key start
LH: loop header
LB: loop body
LE: loop exit
PB: predicated region body
PF: predicated region fallthrough
CT: control target
= control target key end

     0   :  { %v3311_v1 = vmov 0   ;;  %v3312_v2 = vmov 0.0   ;;  %vm3313_vm0 = vmmov 0   ;;  %s3920_s0 = inlined_call_operand.vmem [shape: s32[16,1], index: 0, kind: input, shape index: {}]   ;;  %s3921_s1 = inlined_call_operand.vmem [shape: f32[16,16], index: 1, kind: input, shape index: {}]   ;;  %s3922_s2 = inlined_call_operand.vmem [shape: bf16[32,32], index: 2, kind: input, shape index: {}]   ;;  %s3923_s3 = inlined_call_operand.vmem [shape: f32[16,32], index: 3, kind: input, shape index: {}]   ;;  %s3924_s4 = inlined_call_operand.vmem [shape: bf16[2,32,96], index: 4, kind: input, shape index: {}]   ;;  %s3925_s5 = inlined_call_operand.vmem [shape: bf16[2,32,32], index: 5, kind: input, shape index: {}]   ;;  %s3926_s6 = inlined_call_operand.vmem [shape: bf16[2,32,64], index: 6, kind: input, shape index: {}]   ;;  %s3927_s7 = inlined_call_operand.vmem [shape: bf16[2,64,32], index: 7, kind: input, shape index: {}]   ;;  %s3928_s8 = inlined_call_operand.vmem [shape: f32[2,8,96], index: 8, kind: input, shape index: {}]   ;;  %s3929_s9 = inlined_call_operand.hbm [shape: f32[16,32], index: 9, kind: output, shape index: {0}]   ;;  %s3930_s10 = inlined_call_operand.vmem [shape: f32[16,64], index: 10, kind: output, shape index: {1}]  }
   0x1   :  { %v38_v0 = vld [vmem:[%s3920_s0] sm:$0xff]  ;;  %3072 = vset.pattern.permute.xlu0 %v3311_v1  ;;  %2780 = vmatprep.subr.bf16.mxu0 %v3312_v2  ;;  %v39_v4 = vld [vmem:[%s3920_s0 + $0x8] sm:$0xff] }
   0x2   :  { %v3183_v3 = vld [vmem:[%s3922_s2] sm:$0xff]   ;;  %41 = vperm.xlu0 %3072, %v38_v0   ;;  %v3184_v5 = vld [vmem:[%s3922_s2 + $0x8] sm:$0xff]   ;;  %2784 = vmatprep.mubr.msk.bf16.mxu0 %vm3313_vm0, %v3312_v2 }
   0x3   :  { %2781 = vmatpush3.bf16.msra.mxu0 %v3183_v3 }
   0x4   :  { %2782 = vmatprep.subr.bf16.mxu0 %v3312_v2 }
   0x6   :  { %44 = vperm.xlu0 %3072, %v39_v4  }
   0x7   :  { %2783 = vmatpush3.bf16.msra.mxu0 %v3184_v5 }
   0x8   :  { %2788 = vmatprep.subr.bf16.mxu0 %v3312_v2 }
   0x9   :  { %16 = vsyncpa [#allocation3], 0  ;;  %v36_v6 = vlaneseq  ;;  %vm71_vm3 = vcmask 261120   ;;  %v3185_v13 = vld [vmem:[%s3924_s4] sm:$0xff]   ;;  %v3186_v14 = vld [vmem:[%s3924_s4 + $0x8] sm:$0xff]   ;;  %vm206_vm4 = vcmask 64512  }
   0xa   :  { %v57_v15 = vld [vmem:[%s3923_s3] sm:$0xff]  ;;  %v58_v17 = vld [vmem:[%s3923_s3 + $0x8] sm:$0xff]  ;;  %s3314_s3 = smov 120   ;;  %s3315_s29 = smov 96   ;;  %vm3459_vm5 = vmpackc.low %vm206_vm4, %vm206_vm4  ;;  %vm294_vm6 = vcmask 130048   ;;  %vm1044_vm7 = vcmask 195584  }
   0xb   :  { %v37_v7 = vand.u32 127, %v36_v6  ;;  %v3428_v24 = vshrl.u32 %v36_v6, 7  ;;  %v3434_v26 = vld [vmem:[%s3928_s8] sm:$0xff]  ;;  %s3316_s30 = smov 88   ;;  %v3478_v47 = vld [vmem:[%s3921_s1 + $0x8] sm:$0xff]  ;;  %s3317_s15 = smov 64  }
   0xc   :  { %v3483_v50 = vld [vmem:[%s3921_s1] sm:$0xff]  ;;  %s3318_s16 = smov 80   ;;  %s3319_s17 = smov 72   ;;  %vm1241_vm8 = vcmask 523264   ;;  %vm2556_vm9 = vcmask 392192  }
   0xd   :  { %v142_v25 = vsub.s32 0, %v3428_v24  ;;  %s3320_s18 = smov 56   ;;  %s3321_s19 = smov 112  }
   0xe   :  { %s3322_s20 = smov 104   ;;  %s3323_s0 = smov 48  }
   0xf   :  { %v143_v27 = vrot.slane %v3434_v26, %v142_v25  ;;  %s3324_s2 = smov 8   ;;  %s3325_s21 = smov 40  }
  0x10   :  { %s3326_s26 = smov 16   ;;  %s3327_s27 = smov 24  }
  0x11   :  { %s3329_s23 = smov [#allocation2]  }
  0x81   :  { %v42_v8 = vpop.permute.xlu0 %41 }
  0x82   :  { %vm46_vm1 = vcmp.eq.s32.totalorder %v42_v8, %v37_v7 }
  0x83   :  { %v2583_v10 = vsel %vm46_vm1, 1.0, %v3312_v2 }
  0x85   :  { %v45_v9 = vpop.permute.xlu0 %44 }
  0x86   :  { %vm47_vm2 = vcmp.eq.s32.totalorder %v45_v9, %v37_v7 }
  0x87   :  { %v2584_v11 = vsel %vm47_vm2, 1.0, %v3312_v2 }
  0x88   :  { %v52_v12 = vpack.c.bf16 %v2584_v11, %v2583_v10 }
  0x8a   :  { %2785 = vmatmul.mubr.msk.bf16.vlgmr.msra.gmra.mrb[0].mxu0 %vm71_vm3, %v52_v12 }
  0x8b   :  { %2792 = vmatprep.mubr.msk.bf16.mxu0 %vm3313_vm0, %v3312_v2  ;;  %2789 = vmatpush3.bf16.msra.mxu0 %v3185_v13 }
  0x8c   :  { %2790 = vmatprep.subr.bf16.mxu0 %v3312_v2 }
  0x8f   :  { %2791 = vmatpush3.bf16.msra.mxu0 %v3186_v14 }
 0x15d   :  { %v109_v16 = vpop.f32.mrb[0].mxu0 }
 0x15e   :  { %v2786_v18 = vpop.f32.mrb[1].mxu0  ;;  %v3421_v20 = vadd.f32 %v109_v16, %v57_v15 }
 0x15f   :  { %v112_v19 = vpop.f32.mrb[2].mxu0 }
 0x160   :  { %v3423_v21 = vadd.f32 %v112_v19, %v58_v17  ;;  %v2787_v22 = vpop.f32.mrb[3].mxu0 }
 0x162   :  { %v139_v23 = vpack.c.bf16 %v3423_v21, %v3421_v20 }
 0x164   :  { %2793 = vmatmul.mubr.msk.bf16.vlgmr.msra.gmra.mrb[4].mxu0 %vm71_vm3, %v139_v23 }
 0x237   :  { %v193_v28 = vpop.f32.mrb[4].mxu0 }
 0x238   :  { %v3439_v29 = vadd.f32 %v193_v28, %v143_v27  ;;  %v2794_v30 = vpop.f32.mrb[5].mxu0 }
 0x239   :  { %v196_v31 = vpop.f32.mrb[6].mxu0 }
 0x23a   :  { %v3441_v32 = vadd.f32 %v196_v31, %v143_v27  ;;  %404 = vrot.lane.b32.xlu0 %v3439_v29, %s3314_s3  ;;  %v2795_v33 = vpop.f32.mrb[7].mxu0  ;;  %2800 = vmatprep.mubr.msk.f32.mxu0 %vm206_vm4, %v3439_v29 }
 0x23c   :  { %v3449_v34 = vpack.i.bf16 %v3441_v32, %v3439_v29 }
 0x23e   :  { %3074 = vrot.lane.b32.xlu1 %v3449_v34, %s3315_s29 }
 0x242   :  { %3079 = vrot.lane.b32.xlu1 %v3449_v34, %s3316_s30 }
 0x246   :  { %406 = vrot.lane.b32.xlu1 %v3441_v32, %s3314_s3 }
 0x2ac   :  { %v405_v44 = vpop.permute.xlu0 %404 }
 0x2b0   :  { %v3075_v35 = vpop.permute.xlu1 %3074 }
 0x2b1   :  { %v3077_v36 = vunpack.i.h.bf16 %v3075_v35  ;;  %v3076_v37 = vunpack.i.l.bf16 %v3075_v35 }
 0x2b3   :  { %v2972_v39 = vpack.c.bf16 %v3077_v36, %v3076_v37 }
 0x2b4   :  { %v3080_v40 = vpop.permute.xlu1 %3079 }
 0x2b5   :  { %v3082_v41 = vunpack.i.h.bf16 %v3080_v40  ;;  %v3081_v42 = vunpack.i.l.bf16 %v3080_v40  ;;  %2974 = vmatprep.subr.msk.bf16.mxu0 %vm3459_vm5, %v2972_v39 }
 0x2b6   :  { %2977 = vmatpush3.bf16.xpose.msk.msra.mxu0 %vm3459_vm5, %v2972_v39 }
 0x2b7   :  { %v2982_v43 = vpack.c.bf16 %v3082_v41, %v3081_v42 }
 0x2b8   :  { %v407_v45 = vpop.permute.xlu1 %406 }
 0x2b9   :  { %2984 = vmatprep.subr.msk.bf16.mxu0 %vm3459_vm5, %v2982_v43 }
 0x2bd   :  { %2801 = vmatmul.mubr.msk.f32.vlgmr.msra.gmra.mrb[8].mxu0 %vm206_vm4, %v3441_v32 }
 0x2be   :  { %2987 = vmatpush3.bf16.xpose.msk.msra.mxu0 %vm3459_vm5, %v2982_v43  ;;  %2814 = vmatprep.mubr.msk.f32.mxu0 %vm206_vm4, %v405_v44 }
 0x2c5   :  { %2815 = vmatmul.mubr.msk.f32.vlgmr.msra.gmra.mrb[10].mxu0 %vm206_vm4, %v407_v45 }
 0x390   :  { %v2802_v46 = vpop.f32.mrb[8].mxu0 }
 0x391   :  { %v291_v48 = vmul.f32 0.35355338, %v2802_v46  ;;  %v281_v49 = vpop.f32.mrb[9].mxu0 }
 0x392   :  { %v290_v51 = vmul.f32 0.35355338, %v281_v49 }
 0x393   :  { %v293_v52 = vadd.f32 %v291_v48, %v3478_v47 }
 0x394   :  { %v292_v53 = vadd.f32 %v290_v51, %v3483_v50 }
 0x395   :  { %v298_v54 = vsel %vm294_vm6, %v293_v52, -inf }
 0x396   :  { %299 = vmax.xlane.f32.xlu1 %v298_v54  ;;  %v295_v55 = vsel %vm294_vm6, %v292_v53, -inf }
 0x397   :  { %296 = vmax.xlane.f32.xlu0 %v295_v55 }
 0x398   :  { %v2816_v56 = vpop.f32.mrb[10].mxu0 }
 0x399   :  { %v486_v57 = vpop.f32.mrb[11].mxu0  ;;  %v496_v58 = vmul.f32 0.35355338, %v2816_v56 }
 0x39a   :  { %v495_v59 = vmul.f32 0.35355338, %v486_v57 }
 0x39b   :  { %v498_v62 = vadd.f32 %v496_v58, %v3478_v47 }
 0x39c   :  { %v497_v60 = vadd.f32 %v495_v59, %v3483_v50 }
 0x39d   :  { %v502_v63 = vsel %vm294_vm6, %v498_v62, -inf }
 0x39e   :  { %v499_v61 = vsel %vm294_vm6, %v497_v60, -inf }
 0x39f   :  { %500 = vmax.xlane.f32.xlu0 %v499_v61 }
 0x3a3   :  { %503 = vmax.xlane.f32.xlu0 %v502_v63 }
 0x3a7   :  { %3084 = vrot.lane.b32.xlu1 %v3449_v34, %s3317_s15 }
 0x423   :  { %v300_v0 = vpop.xlane.xlu1 %299 }
 0x424   :  { %v302_v1 = vsub.f32 %v293_v52, %v300_v0  ;;  %v297_v3 = vpop.xlane.xlu0 %296 }
 0x425   :  { %v301_v4 = vsub.f32 %v292_v53, %v297_v3 }
 0x426   :  { %v305_v5 = vmul.f32 1.442695, %v302_v1 }
 0x427   :  { %v303_v6 = vmul.f32 1.442695, %v301_v4  ;;  %v3085_v7 = vpop.permute.xlu1 %3084 }
 0x428   :  { %3205 = vpow2.f32 %v305_v5  ;;  %v3087_v8 = vunpack.i.h.bf16 %v3085_v7  ;;  %v3086_v9 = vunpack.i.l.bf16 %v3085_v7 }
 0x429   :  { %3207 = vpow2.f32 %v303_v6 }
 0x42a   :  { %v2978_v10 = vpack.c.bf16 %v3087_v8, %v3086_v9 }
 0x42c   :  { %2979 = vmatprep.subr.bf16.mxu1 %v2978_v10  ;;  %v501_v11 = vpop.xlane.xlu0 %500 }
 0x42d   :  { %2981 = vmatpush3.bf16.msra.mxu1 %v2978_v10  ;;  %v505_v23 = vsub.f32 %v497_v60, %v501_v11 }
 0x42f   :  { %v507_v27 = vmul.f32 1.442695, %v505_v23 }
 0x430   :  { %v504_v12 = vpop.xlane.xlu0 %503 }
 0x431   :  { %v506_v13 = vsub.f32 %v498_v62, %v504_v12 }
 0x432   :  { %v3206_v14 = vpop.eup %3205 }
 0x433   :  { %v3208_v15 = vpop.eup %3207  ;;  %v509_v16 = vmul.f32 1.442695, %v506_v13  ;;  %v310_v17 = vsel %vm294_vm6, %v3206_v14, 0.0 }
 0x434   :  { %311 = vadd.xlane.f32.xlu0 %v310_v17  ;;  %v307_v18 = vsel %vm294_vm6, %v3208_v15, 0.0 }
 0x435   :  { %3209 = vpow2.f32 %v509_v16  ;;  %308 = vadd.xlane.f32.xlu1 %v307_v18 }
 0x436   :  { %3211 = vpow2.f32 %v507_v27 }
 0x43f   :  { %v3497_v19 = vpop.eup %3209 }
 0x440   :  { %v514_v22 = vsel %vm294_vm6, %v3497_v19, 0.0  ;;  %v3212_v28 = vpop.eup %3211 }
 0x441   :  { %515 = vadd.xlane.f32.xlu0 %v514_v22  ;;  %v511_v30 = vsel %vm294_vm6, %v3212_v28, 0.0 }
 0x446   :  { %3094 = vrot.lane.b32.xlu1 %v3449_v34, %s3318_s16 }
 0x44a   :  { %3099 = vrot.lane.b32.xlu1 %v3449_v34, %s3319_s17 }
 0x457   :  { %3089 = vrot.lane.b32.xlu0 %v3449_v34, %s3320_s18 }
 0x45b   :  { %608 = vrot.lane.b32.xlu0 %v3439_v29, %s3321_s19 }
 0x45f   :  { %812 = vrot.lane.b32.xlu0 %v3439_v29, %s3322_s20 }
 0x46e   :  { %512 = vadd.xlane.f32.xlu1 %v511_v30 }
 0x47f   :  { %610 = vrot.lane.b32.xlu1 %v3441_v32, %s3321_s19 }
 0x483   :  { %814 = vrot.lane.b32.xlu1 %v3441_v32, %s3322_s20 }
 0x4c1   :  { %v312_v31 = vpop.xlane.xlu0 %311 }
 0x4c2   :  { %3213 = vrcp.f32 %v312_v31  ;;  %v309_v33 = vpop.xlane.xlu1 %308 }
 0x4c3   :  { %3215 = vrcp.f32 %v309_v33 }
 0x4c6   :  { %v3095_v35 = vpop.permute.xlu1 %3094 }
 0x4c7   :  { %v3097_v45 = vunpack.i.h.bf16 %v3095_v35  ;;  %v3096_v46 = vunpack.i.l.bf16 %v3095_v35 }
 0x4c9   :  { %v2992_v53 = vpack.c.bf16 %v3097_v45, %v3096_v46 }
 0x4ca   :  { %v3100_v36 = vpop.permute.xlu1 %3099 }
 0x4cb   :  { %v3102_v37 = vunpack.i.h.bf16 %v3100_v36  ;;  %v3101_v39 = vunpack.i.l.bf16 %v3100_v36 }
 0x4cc   :  { %v3214_v29 = vpop.eup %3213 }
 0x4cd   :  { %v3216_v40 = vpop.eup %3215  ;;  %v3002_v41 = vpack.c.bf16 %v3102_v37, %v3101_v39  ;;  %v316_v44 = vmul.f32 %v3214_v29, %v3206_v14 }
 0x4ce   :  { %v516_v42 = vpop.xlane.xlu0 %515  ;;  %v315_v43 = vmul.f32 %v3216_v40, %v3208_v15 }
 0x4cf   :  { %3004 = vmatprep.subr.msk.bf16.mxu0 %vm3459_vm5, %v3002_v41  ;;  %3217 = vrcp.f32 %v516_v42 }
 0x4d0   :  { %2807 = vmatprep.mubr.msk.f32.mxu1 %vm294_vm6, %v315_v43  ;;  %3007 = vmatpush3.bf16.xpose.msk.msra.mxu0 %vm3459_vm5, %v3002_v41 }
 0x4d1   :  { %2808 = vmatmul.mubr.msk.f32.vlgmr.msra.gmra.mrb[0].mxu1 %vm294_vm6, %v316_v44  ;;  %2860 = vmatprep.subr.bf16.mxu0 %v3312_v2 }
 0x4d2   :  { %v3090_v32 = vpop.permute.xlu0 %3089 }
 0x4d3   :  { %v3092_v48 = vunpack.i.h.bf16 %v3090_v32  ;;  %v3091_v49 = vunpack.i.l.bf16 %v3090_v32 }
 0x4d5   :  { %v2988_v51 = vpack.c.bf16 %v3092_v48, %v3091_v49 }
 0x4d6   :  { %v609_v52 = vpop.permute.xlu0 %608 }
 0x4d7   :  { %2989 = vmatprep.subr.bf16.mxu1 %v2988_v51 }
 0x4d8   :  { %2991 = vmatpush3.bf16.msra.mxu1 %v2988_v51 }
 0x4d9   :  { %2994 = vmatprep.subr.msk.bf16.mxu1 %vm3459_vm5, %v2992_v53  ;;  %v3218_v58 = vpop.eup %3217 }
 0x4da   :  { %v813_v54 = vpop.permute.xlu0 %812  ;;  %v520_v61 = vmul.f32 %v3218_v58, %v3497_v19 }
 0x4db   :  { %2842 = vmatprep.mubr.msk.f32.mxu0 %vm206_vm4, %v813_v54 }
 0x4fb   :  { %v513_v55 = vpop.xlane.xlu1 %512 }
 0x4fc   :  { %3219 = vrcp.f32 %v513_v55 }
 0x4ff   :  { %v611_v56 = vpop.permute.xlu1 %610 }
 0x503   :  { %v815_v57 = vpop.permute.xlu1 %814 }
 0x504   :  { %2843 = vmatmul.mubr.msk.f32.vlgmr.msra.gmra.mrb[12].mxu0 %vm206_vm4, %v815_v57 }
 0x505   :  { %2864 = vmatprep.mubr.msk.bf16.mxu0 %vm3313_vm0, %v3312_v2 }
 0x506   :  { %v3220_v59 = vpop.eup %3219 }
 0x507   :  { %v519_v60 = vmul.f32 %v3220_v59, %v3212_v28 }
 0x509   :  { %2821 = vmatprep.mubr.msk.f32.mxu1 %vm294_vm6, %v519_v60 }
 0x50a   :  { %2822 = vmatmul.mubr.msk.f32.vlgmr.msra.gmra.mrb[2].mxu1 %vm294_vm6, %v520_v61 }
 0x50b   :  { %2997 = vmatpush3.bf16.xpose.msk.msra.mxu1 %vm3459_vm5, %v2992_v53  ;;  %2828 = vmatprep.mubr.msk.f32.mxu1 %vm206_vm4, %v609_v52 }
 0x512   :  { %2829 = vmatmul.mubr.msk.f32.vlgmr.msra.gmra.mrb[4].mxu1 %vm206_vm4, %v611_v56 }
 0x5a4   :  { %v3536_v62 = vpop.f32.mrb[0].mxu1 }
 0x5a5   :  { %v3538_v63 = vpop.f32.mrb[1].mxu1 }
 0x5d7   :  { %v2844_v0 = vpop.f32.mrb[12].mxu0 }
 0x5d8   :  { %v894_v1 = vpop.f32.mrb[13].mxu0  ;;  %v904_v14 = vmul.f32 0.35355338, %v2844_v0 }
 0x5d9   :  { %v903_v9 = vmul.f32 0.35355338, %v894_v1 }
 0x5da   :  { %v906_v18 = vadd.f32 %v904_v14, %v3478_v47 }
 0x5db   :  { %v905_v16 = vadd.f32 %v903_v9, %v3483_v50 }
 0x5dc   :  { %v910_v19 = vsel %vm294_vm6, %v906_v18, -inf }
 0x5dd   :  { %v2823_v3 = vpop.f32.mrb[2].mxu1  ;;  %v907_v17 = vsel %vm294_vm6, %v905_v16, -inf }
 0x5de   :  { %v599_v4 = vpop.f32.mrb[3].mxu1 }
 0x5df   :  { %v3113_v5 = vpack.i.bf16 %v2823_v3, %v599_v4 }
 0x5e5   :  { %v2830_v6 = vpop.f32.mrb[4].mxu1 }
 0x5e6   :  { %v700_v7 = vmul.f32 0.35355338, %v2830_v6  ;;  %v690_v8 = vpop.f32.mrb[5].mxu1 }
 0x5e7   :  { %v699_v10 = vmul.f32 0.35355338, %v690_v8  ;;  %v3188_v8 = vld [vmem:[%s3925_s5 + $0x8] sm:$0xff]  }
 0x5e8   :  { %v702_v11 = vadd.f32 %v700_v7, %v3478_v47  ;;  %v3187_v7 = vld [vmem:[%s3925_s5] sm:$0xff]  }
 0x5e9   :  { %v701_v12 = vadd.f32 %v699_v10, %v3483_v50 }
 0x5ea   :  { %v706_v13 = vsel %vm294_vm6, %v702_v11, -inf }
 0x5eb   :  { %707 = vmax.xlane.f32.xlu1 %v706_v13  ;;  %v703_v15 = vsel %vm294_vm6, %v701_v12, -inf }
 0x5ec   :  { %704 = vmax.xlane.f32.xlu0 %v703_v15 }
 0x5f0   :  { %908 = vmax.xlane.f32.xlu0 %v907_v17 }
 0x5f4   :  { %911 = vmax.xlane.f32.xlu0 %v910_v19 }
 0x678   :  { %v708_v27 = vpop.xlane.xlu1 %707 }
 0x679   :  { %v705_v22 = vpop.xlane.xlu0 %704  ;;  %v710_v31 = vsub.f32 %v702_v11, %v708_v27 }
 0x67a   :  { %v709_v23 = vsub.f32 %v701_v12, %v705_v22 }
 0x67b   :  { %v713_v39 = vmul.f32 1.442695, %v710_v31 }
 0x67c   :  { %v711_v33 = vmul.f32 1.442695, %v709_v23 }
 0x67d   :  { %v909_v28 = vpop.xlane.xlu0 %908 }
 0x67e   :  { %v913_v30 = vsub.f32 %v905_v16, %v909_v28 }
 0x680   :  { %v915_v35 = vmul.f32 1.442695, %v913_v30 }
 0x681   :  { %v912_v36 = vpop.xlane.xlu0 %911 }
 0x682   :  { %3221 = vpow2.f32 %v915_v35  ;;  %v914_v37 = vsub.f32 %v906_v18, %v912_v36 }
 0x683   :  { %3223 = vpow2.f32 %v711_v33 }
 0x684   :  { %v917_v29 = vmul.f32 1.442695, %v914_v37 }
 0x686   :  { %3225 = vpow2.f32 %v917_v29 }
 0x687   :  { %3227 = vpow2.f32 %v713_v39 }
 0x68c   :  { %v3222_v40 = vpop.eup %3221 }
 0x68d   :  { %v919_v41 = vsel %vm294_vm6, %v3222_v40, 0.0  ;;  %v3224_v42 = vpop.eup %3223 }
 0x68e   :  { %920 = vadd.xlane.f32.xlu1 %v919_v41  ;;  %v715_v44 = vsel %vm294_vm6, %v3224_v42, 0.0 }
 0x690   :  { %v3226_v43 = vpop.eup %3225 }
 0x691   :  { %v922_v32 = vsel %vm294_vm6, %v3226_v43, 0.0  ;;  %v3228_v45 = vpop.eup %3227 }
 0x692   :  { %716 = vadd.xlane.f32.xlu1 %v715_v44  ;;  %923 = vadd.xlane.f32.xlu0 %v922_v32  ;;  %v718_v46 = vsel %vm294_vm6, %v3228_v45, 0.0 }
 0x696   :  { %719 = vadd.xlane.f32.xlu0 %v718_v46 }
 0x6a3   :  { %3104 = vrot.lane.b32.xlu1 %v3449_v34, %s3323_s0 }
 0x6a7   :  { %3114 = vrot.lane.b32.xlu1 %v3113_v5, %s3324_s2 }
 0x6ac   :  { %3109 = vrot.lane.b32.xlu0 %v3449_v34, %s3325_s21 }
 0x71b   :  { %v921_v48 = vpop.xlane.xlu1 %920 }
 0x71f   :  { %v717_v49 = vpop.xlane.xlu1 %716  ;;  %v924_v51 = vpop.xlane.xlu0 %923 }
 0x720   :  { %3229 = vrcp.f32 %v717_v49 }
 0x721   :  { %3231 = vrcp.f32 %v921_v48 }
 0x723   :  { %v3105_v52 = vpop.permute.xlu1 %3104  ;;  %v720_v53 = vpop.xlane.xlu0 %719 }
 0x724   :  { %v3107_v54 = vunpack.i.h.bf16 %v3105_v52  ;;  %v3106_v55 = vunpack.i.l.bf16 %v3105_v52  ;;  %3233 = vrcp.f32 %v720_v53 }
 0x725   :  { %3235 = vrcp.f32 %v924_v51 }
 0x726   :  { %v2998_v56 = vpack.c.bf16 %v3107_v54, %v3106_v55 }
 0x727   :  { %v3110_v57 = vpop.permute.xlu0 %3109  ;;  %v3115_v15 = vpop.permute.xlu1 %3114 }
 0x728   :  { %v3112_v58 = vunpack.i.h.bf16 %v3110_v57  ;;  %v3111_v59 = vunpack.i.l.bf16 %v3110_v57  ;;  %2999 = vmatprep.subr.bf16.mxu1 %v2998_v56  ;;  %v3117_v17 = vunpack.i.h.bf16 %v3115_v15  ;;  %v3116_v18 = vunpack.i.l.bf16 %v3115_v15 }
 0x729   :  { %3001 = vmatpush3.bf16.msra.mxu1 %v2998_v56 }
 0x72a   :  { %v3230_v60 = vpop.eup %3229  ;;  %v3008_v61 = vpack.c.bf16 %v3112_v58, %v3111_v59  ;;  %v1041_v27 = vsel %vm206_vm4, %v3536_v62, %v3117_v17  ;;  %v1040_v28 = vsel %vm206_vm4, %v3538_v63, %v3116_v18  ;;  %v1050_v62 = vsub.s32 1, %v3428_v24  ;;  %v3190_v59 = vld [vmem:[%s3926_s6 + $0x8] sm:$0xff]  }
 0x72b   :  { %v723_v34 = vmul.f32 %v3230_v60, %v3224_v42  ;;  %v3232_v0 = vpop.eup %3231  ;;  %v3191_v60 = vld [vmem:[%s3927_s7] sm:$0xff]  }
 0x72c   :  { %3009 = vmatprep.subr.bf16.mxu1 %v3008_v61  ;;  %v927_v5 = vmul.f32 %v3232_v0, %v3222_v40  ;;  %v1051_v63 = vrot.slane %v3434_v26, %v1050_v62 }
 0x72d   :  { %2835 = vmatprep.mubr.msk.f32.mxu1 %vm294_vm6, %v723_v34 }
 0x72e   :  { %v3234_v1 = vpop.eup %3233 }
 0x72f   :  { %v724_v3 = vmul.f32 %v3234_v1, %v3228_v45  ;;  %v3236_v4 = vpop.eup %3235 }
 0x730   :  { %v928_v6 = vmul.f32 %v3236_v4, %v3226_v43 }
 0x731   :  { %2836 = vmatmul.mubr.msk.f32.vlgmr.msra.gmra.mrb[6].mxu1 %vm294_vm6, %v724_v3 }
 0x732   :  { %3011 = vmatpush3.bf16.msra.mxu1 %v3008_v61  ;;  %2849 = vmatprep.mubr.msk.f32.mxu1 %vm294_vm6, %v927_v5  ;;  %v3192_v61 = vld [vmem:[%s3927_s7 + $0x8] sm:$0xff]  }
 0x733   :  { %2852 = vmatprep.subr.bf16.mxu1 %v3312_v2 }
 0x735   :  { %2850 = vmatmul.mubr.msk.f32.vlgmr.msra.gmra.mrb[8].mxu1 %vm294_vm6, %v928_v6  ;;  %v1139_v6 = vsub.s32 4, %v3428_v24 }
 0x736   :  { %2856 = vmatprep.mubr.msk.bf16.mxu1 %vm3313_vm0, %v3312_v2  ;;  %2853 = vmatpush3.bf16.msra.mxu1 %v3187_v7 }
 0x737   :  { %2854 = vmatprep.subr.bf16.mxu1 %v3312_v2  ;;  %v1140_v7 = vrot.slane %v3434_v26, %v1139_v6 }
 0x73a   :  { %2855 = vmatpush3.bf16.msra.mxu1 %v3188_v8  ;;  %v1145_v8 = vsub.s32 5, %v3428_v24 }
 0x73b   :  { %2868 = vmatprep.subr.bf16.mxu1 %v3312_v2 }
 0x804   :  { %v2837_v9 = vpop.f32.mrb[6].mxu1 }
 0x805   :  { %v803_v10 = vpop.f32.mrb[7].mxu1 }
 0x806   :  { %v3118_v11 = vpack.i.bf16 %v2837_v9, %v803_v10 }
 0x808   :  { %3119 = vrot.lane.b32.xlu1 %v3118_v11, %s3326_s26  ;;  %v2851_v12 = vpop.f32.mrb[8].mxu1 }
 0x809   :  { %v1007_v13 = vpop.f32.mrb[9].mxu1 }
 0x80a   :  { %v3123_v14 = vpack.i.bf16 %v2851_v12, %v1007_v13 }
 0x80c   :  { %3124 = vrot.lane.b32.xlu0 %v3123_v14, %s3327_s27  ;;  %v1146_v14 = vrot.slane %v3434_v26, %v1145_v8 }
 0x87a   :  { %v3120_v16 = vpop.permute.xlu1 %3119 }
 0x87b   :  { %v3122_v19 = vunpack.i.h.bf16 %v3120_v16  ;;  %v3121_v22 = vunpack.i.l.bf16 %v3120_v16 }
 0x87d   :  { %v1043_v33 = vsel %vm294_vm6, %v1041_v27, %v3122_v19  ;;  %v1042_v35 = vsel %vm294_vm6, %v1040_v28, %v3121_v22  ;;  %v3193_v19 = vld [vmem:[%s3927_s7 + $0x10] sm:$0xff]   ;;  %v3194_v22 = vld [vmem:[%s3927_s7 + $0x18] sm:$0xff]  }
 0x87e   :  { %v3125_v23 = vpop.permute.xlu0 %3124 }
 0x87f   :  { %v3127_v30 = vunpack.i.h.bf16 %v3125_v23  ;;  %v3126_v31 = vunpack.i.l.bf16 %v3125_v23  ;;  %v1152_v23 = vsub.s32 2, %v3428_v24 }
 0x881   :  { %v1046_v36 = vsel %vm1044_vm7, %v1043_v33, %v3127_v30  ;;  %v1045_v37 = vsel %vm1044_vm7, %v1042_v35, %v3126_v31  ;;  %v1153_v27 = vrot.slane %v3434_v26, %v1152_v23 }
 0x882   :  { %v1047_v39 = vpack.c.bf16 %v1046_v36, %v1045_v37 }
 0x884   :  { %2857 = vmatmul.mubr.msk.bf16.vlgmr.msra.gmra.mrb[12].mxu1 %vm71_vm3, %v1047_v39 }
 0x885   :  { %2876 = vmatprep.mubr.msk.bf16.mxu1 %vm3313_vm0, %v3312_v2  ;;  %2869 = vmatpush3.bf16.msra.mxu1 %v3191_v60  ;;  %v3195_v60 = vld [vmem:[%s3924_s4 + $0x10] sm:$0xff]  }
 0x886   :  { %2870 = vmatprep.subr.bf16.mxu1 %v3312_v2 }
 0x889   :  { %2871 = vmatpush3.bf16.msra.mxu1 %v3192_v61  ;;  %v3196_v61 = vld [vmem:[%s3924_s4 + $0x18] sm:$0xff]   ;;  %s2568_s4 = sshll.u32 %s3329_s23, 4  ;;  %s2569_s4 = int_to_ptr.vmem [resolvable:$true] %s2568_s4 }
 0x88a   :  { %2872 = vmatprep.subr.bf16.mxu1 %v3312_v2  ;;  %p3292_p1 = scmp.lt.s32.totalorder %s2569_s4, %s2569_s4 }
 0x88d   :  { %2873 = vmatpush3.bf16.msra.mxu1 %v3193_v19 }
 0x88e   :  { %2874 = vmatprep.subr.bf16.mxu1 %v3312_v2 }
 0x891   :  { %2875 = vmatpush3.bf16.msra.mxu1 %v3194_v22 }
 0x957   :  { %v1101_v29 = vpop.f32.mrb[12].mxu1 }
 0x958   :  { %v1102_v40 = vadd.f32 %v1101_v29, %v1051_v63  ;;  %v2858_v41 = vpop.f32.mrb[13].mxu1  ;;  %v1215_v29 = vsub.s32 3, %v3428_v24 }
 0x959   :  { %v1104_v42 = vpop.f32.mrb[14].mxu1 }
 0x95a   :  { %v1105_v43 = vadd.f32 %v1104_v42, %v1051_v63  ;;  %v2859_v44 = vpop.f32.mrb[15].mxu1  ;;  %v1108_v32 = vadd.f32 %v1102_v40, %v3421_v20  ;;  %v1216_v40 = vrot.slane %v3434_v26, %v1215_v29 }
 0x95c   :  { %v1110_v45 = vsel %vm71_vm3, %v1108_v32, 0.0  ;;  %v1109_v46 = vadd.f32 %v1105_v43, %v3423_v21  ;;  %v3189_v21 = vld [vmem:[%s3926_s6] sm:$0xff]  }
 0x95d   :  { %1111 = vadd.xlane.f32.xlu1 %v1110_v45  ;;  %2861 = vmatpush3.bf16.msra.mxu0 %v3189_v21 }
 0x95e   :  { %v1113_v48 = vsel %vm71_vm3, %v1109_v46, 0.0  ;;  %2862 = vmatprep.subr.bf16.mxu0 %v3312_v2 }
 0x95f   :  { %1114 = vadd.xlane.f32.xlu0 %v1113_v48 }
 0x961   :  { %2863 = vmatpush3.bf16.msra.mxu0 %v3190_v59 }
 0x962   :  { %2880 = vmatprep.subr.bf16.mxu0 %v3312_v2 }
 0x9ea   :  { %v1112_v49 = vpop.xlane.xlu1 %1111 }
 0x9eb   :  { %v1117_v51 = vmul.f32 0.03125, %v1112_v49 }
 0x9ec   :  { %v1115_v52 = vpop.xlane.xlu0 %1114 }
 0x9ed   :  { %v1119_v53 = vsub.f32 %v1108_v32, %v1117_v51  ;;  %v1118_v54 = vmul.f32 0.03125, %v1115_v52 }
 0x9ef   :  { %v1120_v55 = vsub.f32 %v1109_v46, %v1118_v54  ;;  %v1121_v56 = vmul.f32 %v1119_v53, %v1119_v53 }
 0x9f1   :  { %v1123_v57 = vsel %vm71_vm3, %v1121_v56, 0.0  ;;  %v1122_v58 = vmul.f32 %v1120_v55, %v1120_v55 }
 0x9f2   :  { %1124 = vadd.xlane.f32.xlu0 %v1123_v57 }
 0x9f3   :  { %v1126_v20 = vsel %vm71_vm3, %v1122_v58, 0.0 }
 0x9f4   :  { %1127 = vadd.xlane.f32.xlu1 %v1126_v20 }
 0xa7f   :  { %v1125_v34 = vpop.xlane.xlu0 %1124 }
 0xa80   :  { %v1129_v0 = vmul.f32 0.03125, %v1125_v34 }
 0xa81   :  { %v1128_v1 = vpop.xlane.xlu1 %1127 }
 0xa82   :  { %v1131_v3 = vadd.f32 1e-05, %v1129_v0  ;;  %v1130_v4 = vmul.f32 0.03125, %v1128_v1 }
 0xa84   :  { %3237 = vrsqrt.f32 %v1131_v3  ;;  %v1132_v5 = vadd.f32 1e-05, %v1130_v4 }
 0xa86   :  { %3239 = vrsqrt.f32 %v1132_v5 }
 0xa8e   :  { %v3238_v9 = vpop.eup %3237 }
 0xa8f   :  { %v1135_v10 = vmul.f32 %v3238_v9, %v1119_v53 }
 0xa90   :  { %v3240_v11 = vpop.eup %3239 }
 0xa91   :  { %v1141_v12 = vmul.f32 %v1140_v7, %v1135_v10  ;;  %v1136_v13 = vmul.f32 %v3240_v11, %v1120_v55  ;;  %v1322_v10 = vsub.s32 7, %v3428_v24 }
 0xa93   :  { %v1142_v15 = vmul.f32 %v1140_v7, %v1136_v13  ;;  %v1147_v16 = vadd.f32 %v1146_v14, %v1141_v12  ;;  %v1316_v7 = vsub.s32 6, %v3428_v24 }
 0xa95   :  { %v1148_v17 = vadd.f32 %v1146_v14, %v1142_v15  ;;  %v1317_v9 = vrot.slane %v3434_v26, %v1316_v7 }
 0xa97   :  { %v1149_v18 = vpack.c.bf16 %v1148_v17, %v1147_v16 }
 0xa99   :  { %2865 = vmatmul.mubr.msk.bf16.vlgmr.msra.gmra.mrb[16].mxu0 %vm71_vm3, %v1149_v18 }
 0xa9a   :  { %2884 = vmatprep.mubr.msk.bf16.mxu0 %vm3313_vm0, %v3312_v2  ;;  %2881 = vmatpush3.bf16.msra.mxu0 %v3195_v60 }
 0xa9b   :  { %2882 = vmatprep.subr.bf16.mxu0 %v3312_v2 }
 0xa9e   :  { %2883 = vmatpush3.bf16.msra.mxu0 %v3196_v61 }
 0xb6c   :  { %v1203_v28 = vpop.f32.mrb[16].mxu0 }
 0xb6d   :  { %v1204_v30 = vadd.f32 %v1203_v28, %v1153_v27  ;;  %v2866_v31 = vpop.f32.mrb[17].mxu0 }
 0xb6e   :  { %v1206_v33 = vpop.f32.mrb[18].mxu0 }
 0xb6f   :  { %v1207_v35 = vadd.f32 %v1206_v33, %v1153_v27  ;;  %v2867_v36 = vpop.f32.mrb[19].mxu0  ;;  %v1210_v37 = vmax.f32 %v1204_v30, 0.0  ;;  %v3667_v27 = vld [vmem:[%s3928_s8 + $0x8] sm:$0xff] }
 0xb70   :  { %v1356_v28 = vrot.slane %v3667_v27, %v142_v25 }
 0xb71   :  { %v1211_v39 = vmax.f32 %v1207_v35, 0.0 }
 0xb73   :  { %v1212_v63 = vpack.c.bf16 %v1211_v39, %v1210_v37 }
 0xb75   :  { %2877 = vmatmul.mubr.msk.bf16.vlgmr.msra.gmra.mrb[16].mxu1 %vm1241_vm8, %v1212_v63 }
 0xc48   :  { %v1279_v41 = vpop.f32.mrb[16].mxu1 }
 0xc49   :  { %v1280_v42 = vadd.f32 %v1279_v41, %v1216_v40  ;;  %v2878_v43 = vpop.f32.mrb[17].mxu1 }
 0xc4a   :  { %v1282_v44 = vpop.f32.mrb[18].mxu1 }
 0xc4b   :  { %v1283_v32 = vadd.f32 %v1282_v44, %v1216_v40  ;;  %v2879_v45 = vpop.f32.mrb[19].mxu1  ;;  %v1286_v46 = vadd.f32 %v1280_v42, %v1147_v16  ;;  %v1323_v16 = vrot.slane %v3434_v26, %v1322_v10 }
 0xc4d   :  { %v1288_v48 = vsel %vm71_vm3, %v1286_v46, 0.0  ;;  %v1287_v49 = vadd.f32 %v1283_v32, %v1148_v17 }
 0xc4e   :  { %1289 = vadd.xlane.f32.xlu0 %v1288_v48 }
 0xc4f   :  { %v1291_v51 = vsel %vm71_vm3, %v1287_v49, 0.0 }
 0xc50   :  { %1292 = vadd.xlane.f32.xlu1 %v1291_v51 }
 0xcdb   :  { %v1290_v52 = vpop.xlane.xlu0 %1289 }
 0xcdc   :  { %v1294_v53 = vmul.f32 0.03125, %v1290_v52 }
 0xcdd   :  { %v1293_v54 = vpop.xlane.xlu1 %1292 }
 0xcde   :  { %v1296_v55 = vsub.f32 %v1286_v46, %v1294_v53  ;;  %v1295_v56 = vmul.f32 0.03125, %v1293_v54 }
 0xce0   :  { %v1297_v57 = vsub.f32 %v1287_v49, %v1295_v56  ;;  %v1298_v58 = vmul.f32 %v1296_v55, %v1296_v55 }
 0xce2   :  { %v1300_v20 = vsel %vm71_vm3, %v1298_v58, 0.0  ;;  %v1299_v21 = vmul.f32 %v1297_v57, %v1297_v57 }
 0xce3   :  { %1301 = vadd.xlane.f32.xlu0 %v1300_v20 }
 0xce4   :  { %v1303_v59 = vsel %vm71_vm3, %v1299_v21, 0.0 }
 0xce5   :  { %1304 = vadd.xlane.f32.xlu1 %v1303_v59 }
 0xd70   :  { %v1302_v34 = vpop.xlane.xlu0 %1301 }
 0xd71   :  { %v1306_v0 = vmul.f32 0.03125, %v1302_v34 }
 0xd72   :  { %v1305_v1 = vpop.xlane.xlu1 %1304 }
 0xd73   :  { %v1308_v3 = vadd.f32 1e-05, %v1306_v0  ;;  %v1307_v4 = vmul.f32 0.03125, %v1305_v1 }
 0xd75   :  { %3241 = vrsqrt.f32 %v1308_v3  ;;  %v1309_v5 = vadd.f32 1e-05, %v1307_v4 }
 0xd77   :  { %3243 = vrsqrt.f32 %v1309_v5 }
 0xd7f   :  { %v3242_v11 = vpop.eup %3241 }
 0xd80   :  { %v1312_v12 = vmul.f32 %v3242_v11, %v1296_v55 }
 0xd81   :  { %v3244_v13 = vpop.eup %3243 }
 0xd82   :  { %v1318_v14 = vmul.f32 %v1317_v9, %v1312_v12  ;;  %v1313_v15 = vmul.f32 %v3244_v13, %v1297_v57 }
 0xd84   :  { %v1319_v17 = vmul.f32 %v1317_v9, %v1313_v15  ;;  %v3657_v18 = vadd.f32 %v1323_v16, %v1318_v14 }
 0xd86   :  { %v3659_v19 = vadd.f32 %v1323_v16, %v1319_v17 }
 0xd88   :  { %v1352_v22 = vpack.c.bf16 %v3659_v19, %v3657_v18 }
 0xd8a   :  { %2885 = vmatmul.mubr.msk.bf16.vlgmr.msra.gmra.mrb[20].mxu0 %vm71_vm3, %v1352_v22 }
 0xe5d   :  { %v1406_v26 = vpop.f32.mrb[20].mxu0 }
 0xe5e   :  { %v3672_v30 = vadd.f32 %v1406_v26, %v1356_v28  ;;  %v2886_v31 = vpop.f32.mrb[21].mxu0 }
 0xe5f   :  { %v1409_v33 = vpop.f32.mrb[22].mxu0 }
 0xe60   :  { %v3674_v35 = vadd.f32 %v1409_v33, %v1356_v28  ;;  %v2887_v36 = vpop.f32.mrb[23].mxu0  ;;  %2892 = vmatprep.mubr.msk.f32.mxu0 %vm206_vm4, %v3672_v30 }
 0xe62   :  { %v3680_v37 = vpack.i.bf16 %v3674_v35, %v3672_v30 }
 0xe64   :  { %3134 = vrot.lane.b32.xlu1 %v3680_v37, %s3316_s30  ;;  %3129 = vrot.lane.b32.xlu0 %v3680_v37, %s3315_s29 }
 0xe68   :  { %1615 = vrot.lane.b32.xlu1 %v3672_v30, %s3314_s3  ;;  %3139 = vrot.lane.b32.xlu0 %v3680_v37, %s3318_s16 }
 0xe6c   :  { %1617 = vrot.lane.b32.xlu1 %v3674_v35, %s3314_s3  ;;  %1819 = vrot.lane.b32.xlu0 %v3672_v30, %s3321_s19 }
 0xe70   :  { %1821 = vrot.lane.b32.xlu1 %v3674_v35, %s3321_s19 }
 0xed6   :  { %v3135_v25 = vpop.permute.xlu1 %3134  ;;  %v3130_v39 = vpop.permute.xlu0 %3129 }
 0xed7   :  { %v3137_v63 = vunpack.i.h.bf16 %v3135_v25  ;;  %v3136_v40 = vunpack.i.l.bf16 %v3135_v25  ;;  %v3132_v41 = vunpack.i.h.bf16 %v3130_v39  ;;  %v3131_v42 = vunpack.i.l.bf16 %v3130_v39 }
 0xed9   :  { %v3022_v43 = vpack.c.bf16 %v3137_v63, %v3136_v40  ;;  %v3012_v44 = vpack.c.bf16 %v3132_v41, %v3131_v42 }
 0xeda   :  { %v1616_v32 = vpop.permute.xlu1 %1615  ;;  %v3140_v45 = vpop.permute.xlu0 %3139 }
 0xedb   :  { %v3142_v46 = vunpack.i.h.bf16 %v3140_v45  ;;  %v3141_v48 = vunpack.i.l.bf16 %v3140_v45  ;;  %3014 = vmatprep.subr.msk.bf16.mxu0 %vm3459_vm5, %v3012_v44  ;;  %3024 = vmatprep.subr.msk.bf16.mxu1 %vm3459_vm5, %v3022_v43 }
 0xedc   :  { %2906 = vmatprep.mubr.msk.f32.mxu1 %vm206_vm4, %v1616_v32  ;;  %3017 = vmatpush3.bf16.xpose.msk.msra.mxu0 %vm3459_vm5, %v3012_v44 }
 0xedd   :  { %v3032_v49 = vpack.c.bf16 %v3142_v46, %v3141_v48  ;;  %3027 = vmatpush3.bf16.xpose.msk.msra.mxu1 %vm3459_vm5, %v3022_v43 }
 0xede   :  { %v1618_v51 = vpop.permute.xlu1 %1617  ;;  %v1820_v52 = vpop.permute.xlu0 %1819 }
 0xedf   :  { %3034 = vmatprep.subr.msk.bf16.mxu1 %vm3459_vm5, %v3032_v49 }
 0xee2   :  { %v1822_v53 = vpop.permute.xlu1 %1821 }
 0xee3   :  { %2893 = vmatmul.mubr.msk.f32.vlgmr.msra.gmra.mrb[14].mxu0 %vm206_vm4, %v3674_v35 }
 0xee4   :  { %2907 = vmatmul.mubr.msk.f32.vlgmr.msra.gmra.mrb[10].mxu1 %vm206_vm4, %v1618_v51 }
 0xee5   :  { %3037 = vmatpush3.bf16.xpose.msk.msra.mxu1 %vm3459_vm5, %v3032_v49  ;;  %2920 = vmatprep.mubr.msk.f32.mxu1 %vm206_vm4, %v1820_v52 }
 0xeec   :  { %2921 = vmatmul.mubr.msk.f32.vlgmr.msra.gmra.mrb[20].mxu1 %vm206_vm4, %v1822_v53 }
 0xfb6   :  { %v2894_v54 = vpop.f32.mrb[14].mxu0 }
 0xfb7   :  { %v1503_v55 = vmul.f32 0.35355338, %v2894_v54  ;;  %v2908_v56 = vpop.f32.mrb[10].mxu1  ;;  %v1493_v57 = vpop.f32.mrb[15].mxu0 }
 0xfb8   :  { %v1502_v58 = vmul.f32 0.35355338, %v1493_v57  ;;  %v1697_v20 = vpop.f32.mrb[11].mxu1  ;;  %v1707_v34 = vmul.f32 0.35355338, %v2908_v56 }
 0xfb9   :  { %v1706_v21 = vmul.f32 0.35355338, %v1697_v20  ;;  %v1505_v59 = vadd.f32 %v1503_v55, %v3478_v47 }
 0xfba   :  { %v1504_v60 = vadd.f32 %v1502_v58, %v3483_v50  ;;  %v1709_v11 = vadd.f32 %v1707_v34, %v3478_v47 }
 0xfbb   :  { %v1509_v61 = vsel %vm294_vm6, %v1505_v59, -inf  ;;  %v1708_v1 = vadd.f32 %v1706_v21, %v3483_v50 }
 0xfbc   :  { %1510 = vmax.xlane.f32.xlu1 %v1509_v61  ;;  %v1506_v0 = vsel %vm294_vm6, %v1504_v60, -inf  ;;  %v1713_v14 = vsel %vm294_vm6, %v1709_v11, -inf }
 0xfbd   :  { %1507 = vmax.xlane.f32.xlu0 %v1506_v0  ;;  %v1710_v9 = vsel %vm294_vm6, %v1708_v1, -inf }
 0xfbf   :  { %v2922_v3 = vpop.f32.mrb[20].mxu1 }
 0xfc0   :  { %v1911_v4 = vmul.f32 0.35355338, %v2922_v3  ;;  %v1901_v5 = vpop.f32.mrb[21].mxu1 }
 0xfc1   :  { %v1910_v12 = vmul.f32 0.35355338, %v1901_v5  ;;  %1711 = vmax.xlane.f32.xlu0 %v1710_v9 }
 0xfc2   :  { %v1913_v15 = vadd.f32 %v1911_v4, %v3478_v47 }
 0xfc3   :  { %v1912_v13 = vadd.f32 %v1910_v12, %v3483_v50 }
 0xfc4   :  { %v1917_v17 = vsel %vm294_vm6, %v1913_v15, -inf }
 0xfc5   :  { %v1914_v16 = vsel %vm294_vm6, %v1912_v13, -inf  ;;  %1714 = vmax.xlane.f32.xlu0 %v1713_v14 }
 0xfc6   :  { %1915 = vmax.xlane.f32.xlu1 %v1914_v16 }
 0xfc9   :  { %1918 = vmax.xlane.f32.xlu0 %v1917_v17 }
 0xfd7   :  { %3144 = vrot.lane.b32.xlu1 %v3680_v37, %s3317_s15 }
0x1049   :  { %v1511_v22 = vpop.xlane.xlu1 %1510 }
0x104a   :  { %v1513_v28 = vsub.f32 %v1505_v59, %v1511_v22  ;;  %v1508_v26 = vpop.xlane.xlu0 %1507 }
0x104b   :  { %v1512_v31 = vsub.f32 %v1504_v60, %v1508_v26 }
0x104c   :  { %v1516_v33 = vmul.f32 1.442695, %v1513_v28 }
0x104d   :  { %v1514_v50 = vmul.f32 1.442695, %v1512_v31 }
0x104e   :  { %3245 = vpow2.f32 %v1516_v33  ;;  %v1712_v36 = vpop.xlane.xlu0 %1711 }
0x104f   :  { %3247 = vpow2.f32 %v1514_v50  ;;  %v1716_v47 = vsub.f32 %v1708_v1, %v1712_v36 }
0x1051   :  { %v1718_v25 = vmul.f32 1.442695, %v1716_v47 }
0x1052   :  { %v1715_v39 = vpop.xlane.xlu0 %1714 }
0x1053   :  { %3249 = vpow2.f32 %v1718_v25  ;;  %v1916_v63 = vpop.xlane.xlu1 %1915  ;;  %v1717_v40 = vsub.f32 %v1709_v11, %v1715_v39 }
0x1054   :  { %v1920_v21 = vsub.f32 %v1912_v13, %v1916_v63 }
0x1055   :  { %v1720_v41 = vmul.f32 1.442695, %v1717_v40 }
0x1056   :  { %v1919_v42 = vpop.xlane.xlu0 %1918  ;;  %v1922_v59 = vmul.f32 1.442695, %v1920_v21 }
0x1057   :  { %3251 = vpow2.f32 %v1720_v41  ;;  %v3145_v43 = vpop.permute.xlu1 %3144  ;;  %v1921_v44 = vsub.f32 %v1913_v15, %v1919_v42 }
0x1058   :  { %v3246_v32 = vpop.eup %3245  ;;  %v3147_v45 = vunpack.i.h.bf16 %v3145_v43  ;;  %v3146_v46 = vunpack.i.l.bf16 %v3145_v43 }
0x1059   :  { %v3248_v48 = vpop.eup %3247  ;;  %v1924_v49 = vmul.f32 1.442695, %v1921_v44  ;;  %v1521_v51 = vsel %vm294_vm6, %v3246_v32, 0.0 }
0x105a   :  { %v3018_v52 = vpack.c.bf16 %v3147_v45, %v3146_v46  ;;  %1522 = vadd.xlane.f32.xlu0 %v1521_v51  ;;  %v1518_v53 = vsel %vm294_vm6, %v3248_v48, 0.0 }
0x105b   :  { %3253 = vpow2.f32 %v1924_v49  ;;  %1519 = vadd.xlane.f32.xlu1 %v1518_v53 }
0x105c   :  { %3019 = vmatprep.subr.bf16.mxu0 %v3018_v52  ;;  %3255 = vpow2.f32 %v1922_v59 }
0x105d   :  { %v3250_v54 = vpop.eup %3249  ;;  %3021 = vmatpush3.bf16.msra.mxu0 %v3018_v52 }
0x105e   :  { %v1722_v55 = vsel %vm294_vm6, %v3250_v54, 0.0 }
0x105f   :  { %1723 = vadd.xlane.f32.xlu1 %v1722_v55 }
0x1061   :  { %v3252_v56 = vpop.eup %3251 }
0x1062   :  { %v1725_v57 = vsel %vm294_vm6, %v3252_v56, 0.0 }
0x1063   :  { %1726 = vadd.xlane.f32.xlu0 %v1725_v57  ;;  %v3285_v57 = vld [vmem:[%s3921_s1 + $0x8] sm:$0xff] }
0x1065   :  { %v3254_v58 = vpop.eup %3253 }
0x1066   :  { %v1929_v20 = vsel %vm294_vm6, %v3254_v58, 0.0  ;;  %v3256_v60 = vpop.eup %3255 }
0x1067   :  { %1930 = vadd.xlane.f32.xlu0 %v1929_v20  ;;  %v1926_v61 = vsel %vm294_vm6, %v3256_v60, 0.0  ;;  %v3286_v20 = vld [vmem:[%s3921_s1] sm:$0xff] }
0x1070   :  { %3154 = vrot.lane.b32.xlu1 %v3680_v37, %s3323_s0 }
0x1074   :  { %3159 = vrot.lane.b32.xlu1 %v3680_v37, %s3319_s17 }
0x107d   :  { %3149 = vrot.lane.b32.xlu0 %v3680_v37, %s3320_s18 }
0x1081   :  { %2023 = vrot.lane.b32.xlu0 %v3672_v30, %s3322_s20 }
0x1098   :  { %1927 = vadd.xlane.f32.xlu1 %v1926_v61 }
0x10a9   :  { %2025 = vrot.lane.b32.xlu1 %v3674_v35, %s3322_s20 }
0x10e7   :  { %v1523_v34 = vpop.xlane.xlu0 %1522 }
0x10e8   :  { %3257 = vrcp.f32 %v1523_v34  ;;  %v1520_v0 = vpop.xlane.xlu1 %1519 }
0x10e9   :  { %3259 = vrcp.f32 %v1520_v0 }
0x10ec   :  { %v1724_v1 = vpop.xlane.xlu1 %1723 }
0x10ed   :  { %3261 = vrcp.f32 %v1724_v1 }
0x10f0   :  { %v1727_v3 = vpop.xlane.xlu0 %1726  ;;  %v3155_v5 = vpop.permute.xlu1 %3154 }
0x10f1   :  { %3263 = vrcp.f32 %v1727_v3  ;;  %v3157_v15 = vunpack.i.h.bf16 %v3155_v5  ;;  %v3156_v16 = vunpack.i.l.bf16 %v3155_v5 }
0x10f2   :  { %v3258_v4 = vpop.eup %3257 }
0x10f3   :  { %v3260_v30 = vpop.eup %3259  ;;  %v3746_v12 = vmul.f32 %v3258_v4, %v3246_v32  ;;  %v3038_v33 = vpack.c.bf16 %v3157_v15, %v3156_v16 }
0x10f4   :  { %v1931_v9 = vpop.xlane.xlu0 %1930  ;;  %v3744_v11 = vmul.f32 %v3260_v30, %v3248_v48  ;;  %v3160_v28 = vpop.permute.xlu1 %3159 }
0x10f5   :  { %v3162_v50 = vunpack.i.h.bf16 %v3160_v28  ;;  %v3161_v36 = vunpack.i.l.bf16 %v3160_v28  ;;  %3265 = vrcp.f32 %v1931_v9 }
0x10f6   :  { %2899 = vmatprep.mubr.msk.f32.mxu0 %vm294_vm6, %v3744_v11 }
0x10f7   :  { %v3262_v35 = vpop.eup %3261  ;;  %2900 = vmatmul.mubr.msk.f32.vlgmr.msra.gmra.mrb[24].mxu0 %vm294_vm6, %v3746_v12  ;;  %v3042_v25 = vpack.c.bf16 %v3162_v50, %v3161_v36  ;;  %v3197_v50 = vld [vmem:[%s3925_s5 + $0x10] sm:$0xff]   ;;  %v3198_v36 = vld [vmem:[%s3925_s5 + $0x18] sm:$0xff]  }
0x10f8   :  { %v3150_v13 = vpop.permute.xlu0 %3149  ;;  %v3752_v14 = vmul.f32 %v3262_v35, %v3250_v54 }
0x10f9   :  { %v3152_v17 = vunpack.i.h.bf16 %v3150_v13  ;;  %v3151_v22 = vunpack.i.l.bf16 %v3150_v13 }
0x10fa   :  { %2913 = vmatprep.mubr.msk.f32.mxu0 %vm294_vm6, %v3752_v14 }
0x10fb   :  { %v3028_v26 = vpack.c.bf16 %v3152_v17, %v3151_v22  ;;  %v3264_v31 = vpop.eup %3263 }
0x10fc   :  { %v3756_v47 = vmul.f32 %v3264_v31, %v3252_v56  ;;  %v2024_v43 = vpop.permute.xlu0 %2023 }
0x10fd   :  { %3029 = vmatprep.subr.bf16.mxu0 %v3028_v26 }
0x10fe   :  { %3031 = vmatpush3.bf16.msra.mxu0 %v3028_v26 }
0x10ff   :  { %3039 = vmatprep.subr.bf16.mxu0 %v3038_v33  ;;  %v3266_v63 = vpop.eup %3265 }
0x1100   :  { %v3764_v42 = vmul.f32 %v3266_v63, %v3254_v58 }
0x1101   :  { %2914 = vmatmul.mubr.msk.f32.vlgmr.msra.gmra.mrb[26].mxu0 %vm294_vm6, %v3756_v47 }
0x1102   :  { %3041 = vmatpush3.bf16.msra.mxu0 %v3038_v33 }
0x1103   :  { %3044 = vmatprep.subr.msk.bf16.mxu0 %vm3459_vm5, %v3042_v25 }
0x1125   :  { %v1928_v39 = vpop.xlane.xlu1 %1927 }
0x1126   :  { %3267 = vrcp.f32 %v1928_v39 }
0x1129   :  { %v2026_v44 = vpop.permute.xlu1 %2025 }
0x1130   :  { %v3268_v40 = vpop.eup %3267 }
0x1131   :  { %v3762_v41 = vmul.f32 %v3268_v40, %v3256_v60 }
0x1133   :  { %2927 = vmatprep.mubr.msk.f32.mxu0 %vm294_vm6, %v3762_v41 }
0x1134   :  { %2928 = vmatmul.mubr.msk.f32.vlgmr.msra.gmra.mrb[28].mxu0 %vm294_vm6, %v3764_v42 }
0x1135   :  { %3047 = vmatpush3.bf16.xpose.msk.msra.mxu0 %vm3459_vm5, %v3042_v25  ;;  %2934 = vmatprep.mubr.msk.f32.mxu0 %vm206_vm4, %v2024_v43 }
0x1136   :  { %2952 = vmatprep.subr.bf16.mxu0 %v3312_v2 }
0x113c   :  { %2935 = vmatmul.mubr.msk.f32.vlgmr.msra.gmra.mrb[30].mxu0 %vm206_vm4, %v2026_v44 }
0x113d   :  { %2956 = vmatprep.mubr.msk.bf16.mxu0 %vm3313_vm0, %v3312_v2 }
0x11ca   :  { %v3777_v32 = vpop.f32.mrb[24].mxu0 }
0x11cb   :  { %v3779_v45 = vpop.f32.mrb[25].mxu0 }
0x11d4   :  { %v2915_v46 = vpop.f32.mrb[26].mxu0 }
0x11d5   :  { %v1810_v48 = vpop.f32.mrb[27].mxu0 }
0x11d6   :  { %v3168_v49 = vpack.i.bf16 %v2915_v46, %v1810_v48 }
0x1207   :  { %v2929_v51 = vpop.f32.mrb[28].mxu0 }
0x1208   :  { %v2014_v38 = vpop.f32.mrb[29].mxu0 }
0x1209   :  { %v3173_v52 = vpack.i.bf16 %v2929_v51, %v2014_v38 }
0x120f   :  { %v2936_v53 = vpop.f32.mrb[30].mxu0 }
0x1210   :  { %v2115_v54 = vmul.f32 0.35355338, %v2936_v53  ;;  %v2105_v55 = vpop.f32.mrb[31].mxu0 }
0x1211   :  { %v2114_v56 = vmul.f32 0.35355338, %v2105_v55 }
0x1212   :  { %v2117_v58 = vadd.f32 %v3285_v57, %v2115_v54 }
0x1213   :  { %v2116_v21 = vadd.f32 %v3286_v20, %v2114_v56 }
0x1214   :  { %v2121_v59 = vsel %vm294_vm6, %v2117_v58, -inf }
0x1215   :  { %2122 = vmax.xlane.f32.xlu1 %v2121_v59  ;;  %v2118_v60 = vsel %vm294_vm6, %v2116_v21, -inf }
0x1216   :  { %2119 = vmax.xlane.f32.xlu0 %v2118_v60 }
0x1226   :  { %3164 = vrot.lane.b32.xlu1 %v3680_v37, %s3325_s21 }
0x122a   :  { %3174 = vrot.lane.b32.xlu1 %v3173_v52, %s3326_s26 }
0x12a2   :  { %v2123_v61 = vpop.xlane.xlu1 %2122 }
0x12a3   :  { %v2125_v34 = vsub.f32 %v2117_v58, %v2123_v61  ;;  %v2120_v0 = vpop.xlane.xlu0 %2119 }
0x12a4   :  { %v2124_v1 = vsub.f32 %v2116_v21, %v2120_v0 }
0x12a5   :  { %v2128_v3 = vmul.f32 1.442695, %v2125_v34 }
0x12a6   :  { %v2126_v4 = vmul.f32 1.442695, %v2124_v1  ;;  %v3165_v30 = vpop.permute.xlu1 %3164 }
0x12a7   :  { %v3167_v5 = vunpack.i.h.bf16 %v3165_v30  ;;  %v3166_v9 = vunpack.i.l.bf16 %v3165_v30 }
0x12a8   :  { %3269 = vpow2.f32 %v2126_v4 }
0x12a9   :  { %v3048_v35 = vpack.c.bf16 %v3167_v5, %v3166_v9  ;;  %3271 = vpow2.f32 %v2128_v3 }
0x12aa   :  { %v3175_v46 = vpop.permute.xlu1 %3174 }
0x12ab   :  { %3049 = vmatprep.subr.bf16.mxu1 %v3048_v35  ;;  %v3177_v51 = vunpack.i.h.bf16 %v3175_v46  ;;  %v3176_v38 = vunpack.i.l.bf16 %v3175_v46 }
0x12ac   :  { %3051 = vmatpush3.bf16.msra.mxu1 %v3048_v35 }
0x12ad   :  { %2944 = vmatprep.subr.bf16.mxu1 %v3312_v2 }
0x12b2   :  { %v3270_v13 = vpop.eup %3269 }
0x12b3   :  { %v2130_v37 = vsel %vm294_vm6, %v3270_v13, 0.0  ;;  %v3272_v15 = vpop.eup %3271 }
0x12b4   :  { %2131 = vadd.xlane.f32.xlu0 %v2130_v37  ;;  %v2133_v16 = vsel %vm294_vm6, %v3272_v15, 0.0 }
0x12b8   :  { %2134 = vadd.xlane.f32.xlu0 %v2133_v16 }
0x12ce   :  { %3169 = vrot.lane.b32.xlu0 %v3168_v49, %s3324_s2 }
0x1341   :  { %v2132_v17 = vpop.xlane.xlu0 %2131 }
0x1342   :  { %3273 = vrcp.f32 %v2132_v17  ;;  %v3200_v17 = vld [vmem:[%s3926_s6 + $0x18] sm:$0xff]  }
0x1345   :  { %v2135_v22 = vpop.xlane.xlu0 %2134 }
0x1346   :  { %3275 = vrcp.f32 %v2135_v22  ;;  %v3201_v22 = vld [vmem:[%s3927_s7 + $0x20] sm:$0xff]  }
0x1349   :  { %v3170_v40 = vpop.permute.xlu0 %3169 }
0x134a   :  { %v3172_v43 = vunpack.i.h.bf16 %v3170_v40  ;;  %v3171_v44 = vunpack.i.l.bf16 %v3170_v40 }
0x134c   :  { %v3274_v28 = vpop.eup %3273  ;;  %v2252_v48 = vsel %vm206_vm4, %v3777_v32, %v3172_v43  ;;  %v2251_v49 = vsel %vm206_vm4, %v3779_v45, %v3171_v44  ;;  %v2261_v32 = vrot.slane %v3667_v27, %v1050_v62  ;;  %v2349_v43 = vrot.slane %v3667_v27, %v1139_v6  ;;  %v3204_v6 = vld [vmem:[%s3927_s7 + $0x38] sm:$0xff]  }
0x134d   :  { %v3796_v26 = vmul.f32 %v3274_v28, %v3270_v13  ;;  %v2253_v55 = vsel %vm294_vm6, %v2251_v49, %v3176_v38  ;;  %v2254_v56 = vsel %vm294_vm6, %v2252_v48, %v3177_v51  ;;  %v3202_v28 = vld [vmem:[%s3927_s7 + $0x28] sm:$0xff]   ;;  %v2355_v51 = vrot.slane %v3667_v27, %v1145_v8 }
0x134e   :  { %v2362_v8 = vrot.slane %v3667_v27, %v1152_v23 }
0x134f   :  { %2941 = vmatprep.mubr.msk.f32.mxu1 %vm294_vm6, %v3796_v26 }
0x1350   :  { %v3276_v31 = vpop.eup %3275 }
0x1351   :  { %v3800_v33 = vmul.f32 %v3276_v31, %v3272_v15 }
0x1353   :  { %2942 = vmatmul.mubr.msk.f32.vlgmr.msra.gmra.mrb[22].mxu1 %vm294_vm6, %v3800_v33 }
0x1354   :  { %2948 = vmatprep.mubr.msk.bf16.mxu1 %vm3313_vm0, %v3312_v2  ;;  %2945 = vmatpush3.bf16.msra.mxu1 %v3197_v50 }
0x1355   :  { %2946 = vmatprep.subr.bf16.mxu1 %v3312_v2 }
0x1358   :  { %2947 = vmatpush3.bf16.msra.mxu1 %v3198_v36 }
0x1359   :  { %2960 = vmatprep.subr.bf16.mxu1 %v3312_v2 }
0x1426   :  { %v2943_v25 = vpop.f32.mrb[22].mxu1 }
0x1427   :  { %v2218_v39 = vpop.f32.mrb[23].mxu1 }
0x1428   :  { %v3178_v63 = vpack.i.bf16 %v2943_v25, %v2218_v39 }
0x142a   :  { %3179 = vrot.lane.b32.xlu1 %v3178_v63, %s3327_s27 }
0x149c   :  { %v3180_v52 = vpop.permute.xlu1 %3179 }
0x149d   :  { %v3182_v53 = vunpack.i.h.bf16 %v3180_v52  ;;  %v3181_v54 = vunpack.i.l.bf16 %v3180_v52 }
0x149f   :  { %v2255_v57 = vsel %vm1044_vm7, %v2253_v55, %v3181_v54  ;;  %v2256_v58 = vsel %vm1044_vm7, %v2254_v56, %v3182_v53  ;;  %v3203_v55 = vld [vmem:[%s3927_s7 + $0x30] sm:$0xff]   ;;  %s3328_s7 = smov 32  }
0x14a0   :  { %v2257_v20 = vpack.c.bf16 %v2256_v58, %v2255_v57 }
0x14a2   :  { %2949 = vmatmul.mubr.msk.bf16.vlgmr.msra.gmra.mrb[24].mxu1 %vm71_vm3, %v2257_v20 }
0x14a3   :  { %2968 = vmatprep.mubr.msk.bf16.mxu1 %vm3313_vm0, %v3312_v2  ;;  %2961 = vmatpush3.bf16.msra.mxu1 %v3201_v22 }
0x14a4   :  { %2962 = vmatprep.subr.bf16.mxu1 %v3312_v2 }
0x14a7   :  { %2963 = vmatpush3.bf16.msra.mxu1 %v3202_v28 }
0x14a8   :  { %2964 = vmatprep.subr.bf16.mxu1 %v3312_v2 }
0x14ab   :  { %2965 = vmatpush3.bf16.msra.mxu1 %v3203_v55 }
0x14ac   :  { %2966 = vmatprep.subr.bf16.mxu1 %v3312_v2 }
0x14af   :  { %2967 = vmatpush3.bf16.msra.mxu1 %v3204_v6 }
0x1575   :  { %v2311_v45 = vpop.f32.mrb[24].mxu1 }
0x1576   :  { %v2312_v21 = vadd.f32 %v2311_v45, %v2261_v32  ;;  %v2950_v59 = vpop.f32.mrb[25].mxu1 }
0x1577   :  { %v2314_v60 = vpop.f32.mrb[26].mxu1 }
0x1578   :  { %v2315_v61 = vadd.f32 %v2314_v60, %v2261_v32  ;;  %v2951_v34 = vpop.f32.mrb[27].mxu1  ;;  %v2318_v0 = vadd.f32 %v2312_v21, %v3657_v18 }
0x157a   :  { %v2320_v1 = vsel %vm71_vm3, %v2318_v0, 0.0  ;;  %v2319_v3 = vadd.f32 %v2315_v61, %v3659_v19  ;;  %v3199_v19 = vld [vmem:[%s3926_s6 + $0x10] sm:$0xff]  }
0x157b   :  { %2321 = vadd.xlane.f32.xlu0 %v2320_v1  ;;  %2953 = vmatpush3.bf16.msra.mxu0 %v3199_v19 }
0x157c   :  { %v2323_v4 = vsel %vm71_vm3, %v2319_v3, 0.0  ;;  %2954 = vmatprep.subr.bf16.mxu0 %v3312_v2  ;;  %v2425_v2 = vrot.slane %v3667_v27, %v1215_v29 }
0x157d   :  { %2324 = vadd.xlane.f32.xlu1 %v2323_v4 }
0x157f   :  { %2955 = vmatpush3.bf16.msra.mxu0 %v3200_v17 }
0x1608   :  { %v2322_v30 = vpop.xlane.xlu0 %2321 }
0x1609   :  { %v2326_v5 = vmul.f32 0.03125, %v2322_v30 }
0x160a   :  { %v2325_v9 = vpop.xlane.xlu1 %2324 }
0x160b   :  { %v2328_v62 = vsub.f32 %v2318_v0, %v2326_v5  ;;  %v2327_v35 = vmul.f32 0.03125, %v2325_v9 }
0x160d   :  { %v2329_v13 = vsub.f32 %v2319_v3, %v2327_v35  ;;  %v2330_v37 = vmul.f32 %v2328_v62, %v2328_v62 }
0x160f   :  { %v2332_v15 = vsel %vm71_vm3, %v2330_v37, 0.0  ;;  %v2331_v16 = vmul.f32 %v2329_v13, %v2329_v13 }
0x1610   :  { %2333 = vadd.xlane.f32.xlu0 %v2332_v15 }
0x1611   :  { %v2335_v18 = vsel %vm71_vm3, %v2331_v16, 0.0 }
0x1614   :  { %2336 = vadd.xlane.f32.xlu0 %v2335_v18 }
0x169d   :  { %v2334_v31 = vpop.xlane.xlu0 %2333 }
0x169e   :  { %v2338_v50 = vmul.f32 0.03125, %v2334_v31 }
0x16a0   :  { %v2340_v36 = vadd.f32 1e-05, %v2338_v50 }
0x16a1   :  { %v2337_v25 = vpop.xlane.xlu0 %2336 }
0x16a2   :  { %3277 = vrsqrt.f32 %v2340_v36  ;;  %v2339_v39 = vmul.f32 0.03125, %v2337_v25 }
0x16a4   :  { %v2341_v63 = vadd.f32 1e-05, %v2339_v39 }
0x16a6   :  { %3279 = vrsqrt.f32 %v2341_v63 }
0x16ac   :  { %v3278_v40 = vpop.eup %3277 }
0x16ad   :  { %v2344_v44 = vmul.f32 %v3278_v40, %v2328_v62 }
0x16af   :  { %v2350_v48 = vmul.f32 %v2349_v43, %v2344_v44 }
0x16b0   :  { %v3280_v46 = vpop.eup %3279 }
0x16b1   :  { %v2345_v49 = vmul.f32 %v3280_v46, %v2329_v13  ;;  %v2356_v52 = vadd.f32 %v2355_v51, %v2350_v48 }
0x16b3   :  { %v2351_v38 = vmul.f32 %v2349_v43, %v2345_v49  ;;  %v2531_v49 = vrot.slane %v3667_v27, %v1322_v10 }
0x16b5   :  { %v2357_v53 = vadd.f32 %v2355_v51, %v2351_v38 }
0x16b7   :  { %v2358_v54 = vpack.c.bf16 %v2357_v53, %v2356_v52 }
0x16b9   :  { %2957 = vmatmul.mubr.msk.bf16.vlgmr.msra.gmra.mrb[32].mxu0 %vm71_vm3, %v2358_v54 }
0x178c   :  { %v2412_v56 = vpop.f32.mrb[32].mxu0 }
0x178d   :  { %v2413_v57 = vadd.f32 %v2412_v56, %v2362_v8  ;;  %v2958_v58 = vpop.f32.mrb[33].mxu0 }
0x178e   :  { %v2415_v20 = vpop.f32.mrb[34].mxu0 }
0x178f   :  { %v2416_v32 = vadd.f32 %v2415_v20, %v2362_v8  ;;  %v2959_v45 = vpop.f32.mrb[35].mxu0  ;;  %v2419_v21 = vmax.f32 %v2413_v57, 0.0 }
0x1791   :  { %v2420_v59 = vmax.f32 %v2416_v32, 0.0 }
0x1793   :  { %v2421_v60 = vpack.c.bf16 %v2420_v59, %v2419_v21 }
0x1795   :  { %2969 = vmatmul.mubr.msk.bf16.vlgmr.msra.gmra.mrb[28].mxu1 %vm1241_vm8, %v2421_v60 }
0x1868   :  { %v2487_v61 = vpop.f32.mrb[28].mxu1 }
0x1869   :  { %v2488_v34 = vadd.f32 %v2487_v61, %v2425_v2  ;;  %v2970_v0 = vpop.f32.mrb[29].mxu1 }
0x186a   :  { %v2490_v1 = vpop.f32.mrb[30].mxu1 }
0x186b   :  { %v2491_v23 = vadd.f32 %v2490_v1, %v2425_v2  ;;  %v2971_v3 = vpop.f32.mrb[31].mxu1  ;;  %v2494_v4 = vadd.f32 %v2488_v34, %v2356_v52 }
0x186d   :  { %v2496_v30 = vsel %vm71_vm3, %v2494_v4, 0.0  ;;  %v2495_v5 = vadd.f32 %v2491_v23, %v2357_v53 }
0x186e   :  { %2497 = vadd.xlane.f32.xlu1 %v2496_v30 }
0x186f   :  { %v2499_v9 = vsel %vm71_vm3, %v2495_v5, 0.0 }
0x1870   :  { %2500 = vadd.xlane.f32.xlu0 %v2499_v9 }
0x187f   :  { %2534 = vrot.lane.b32.xlu1 %v3752_v14, %s3326_s26 }
0x18fb   :  { %v2498_v62 = vpop.xlane.xlu1 %2497 }
0x18fc   :  { %v2502_v35 = vmul.f32 0.03125, %v2498_v62 }
0x18fd   :  { %v2501_v29 = vpop.xlane.xlu0 %2500 }
0x18fe   :  { %v2504_v13 = vsub.f32 %v2494_v4, %v2502_v35  ;;  %v2503_v37 = vmul.f32 0.03125, %v2501_v29 }
0x18ff   :  { %v2535_v14 = vpop.permute.xlu1 %2534 }
0x1900   :  { %v2505_v15 = vsub.f32 %v2495_v5, %v2503_v37  ;;  %v2506_v16 = vmul.f32 %v2504_v13, %v2504_v13 }
0x1902   :  { %v2508_v18 = vsel %vm71_vm3, %v2506_v16, 0.0  ;;  %v2507_v19 = vmul.f32 %v2505_v15, %v2505_v15 }
0x1903   :  { %2509 = vadd.xlane.f32.xlu1 %v2508_v18 }
0x1904   :  { %v2511_v17 = vsel %vm71_vm3, %v2507_v19, 0.0 }
0x1905   :  { %2512 = vadd.xlane.f32.xlu0 %v2511_v17 }
0x1914   :  { %2540 = vrot.lane.b32.xlu1 %v3762_v41, %s3328_s7 }
0x1918   :  { %2542 = vrot.lane.b32.xlu1 %v3764_v42, %s3328_s7 }
0x191b   :  { %2536 = vrot.lane.b32.xlu0 %v3756_v47, %s3326_s26  ;;  %v2552_v47 = vsel %vm294_vm6, %v3744_v11, %v2535_v14  ;;  %v2525_v11 = vrot.slane %v3667_v27, %v1316_v7 }
0x191c   :  { %2548 = vrot.lane.b32.xlu1 %v3800_v33, %s3323_s0 }
0x191f   :  { %2546 = vrot.lane.b32.xlu0 %v3796_v26, %s3323_s0 }
0x1990   :  { %v2510_v22 = vpop.xlane.xlu1 %2509 }
0x1991   :  { %v2514_v28 = vmul.f32 0.03125, %v2510_v22 }
0x1992   :  { %v2513_v31 = vpop.xlane.xlu0 %2512 }
0x1993   :  { %v2516_v50 = vadd.f32 1e-05, %v2514_v28  ;;  %v2515_v36 = vmul.f32 0.03125, %v2513_v31 }
0x1994   :  { %v2541_v25 = vpop.permute.xlu1 %2540 }
0x1995   :  { %3281 = vrsqrt.f32 %v2516_v50  ;;  %v2517_v41 = vadd.f32 1e-05, %v2515_v36  ;;  %v2554_v26 = vsel %vm71_vm3, %v2552_v47, %v2541_v25 }
0x1996   :  { %v2537_v39 = vpop.permute.xlu0 %2536 }
0x1997   :  { %3283 = vrsqrt.f32 %v2517_v41  ;;  %v2553_v33 = vsel %vm294_vm6, %v3746_v12, %v2537_v39 }
0x1998   :  { %v2543_v42 = vpop.permute.xlu1 %2542 }
0x1999   :  { %v2555_v43 = vsel %vm71_vm3, %v2553_v33, %v2543_v42 }
0x199a   :  { %v2547_v63 = vpop.permute.xlu0 %2546 }
0x199b   :  { %v2557_v40 = vsel %vm2556_vm9, %v2554_v26, %v2547_v63 }
0x199c   :  { %2559 = vst.msk [vmem:[%s3930_s10] sm:$0xff] %vm1241_vm8, %v2557_v40  ;;  %v2549_v44 = vpop.permute.xlu1 %2548 }
0x199d   :  { %v2558_v46 = vsel %vm2556_vm9, %v2555_v43, %v2549_v44 }
0x199e   :  { %2560 = vst.msk [vmem:[%s3930_s10 + $0x8] sm:$0xff] %vm1241_vm8, %v2558_v46  ;;  %s3287_s10 = scalar_lea.vmem %s2569_s4, 256 }
0x199f   :  { %v3282_v12 = vpop.eup %3281  ;;  %p3288_p0 = scmp.ne.s32.totalorder %s2569_s4, %s3287_s10  ;;  %p3293_p2 = scmp.lt.s32.totalorder %s3287_s10, %s3287_s10 }
0x19a0   :  { %v2520_v48 = vmul.f32 %v3282_v12, %v2504_v13 }
0x19a1   :  { %v3284_v51 = vpop.eup %3283  ;;  %p3294_p3 = por %p3293_p2, %p3292_p1 }
0x19a2   :  { %v2521_v38 = vmul.f32 %v3284_v51, %v2505_v15  ;;  %v2526_v52 = vmul.f32 %v2525_v11, %v2520_v48 }
0x19a3   :  { %p3295_p4 = pnand %p3294_p3, %p3288_p0 }
0x19a4   :  { %v2527_v53 = vmul.f32 %v2525_v11, %v2521_v38  ;;  %v2532_v54 = vadd.f32 %v2531_v49, %v2526_v52 }
0x19a6   :  { %v2533_v55 = vadd.f32 %v2531_v49, %v2527_v53  ;;  %2561 = vst.msk [vmem:[#allocation2] sm:$0xff] %vm71_vm3, %v2532_v54 }
0x19a8   :  { %2562 = vst.msk [vmem:[#allocation2 + $0x8] sm:$0xff] %vm71_vm3, %v2533_v55 }
0x19a9   :  { %3298 = shalt.err (!%p3295_p4)
}
0x19aa   :  { %s3299_s3 = scalar_lea.hbm %s3929_s9, 256 }
0x19ab   :  { %p3300_p5 = scmp.ne.s32.totalorder %s3929_s9, %s3299_s3  ;;  %p3303_p6 = scmp.lt.u32.totalorder %s3299_s3, %s3929_s9 }
0x19ad   :  { %p3305_p7 = pnand %p3303_p6, %p3300_p5 }
0x19af   :  { %3308 = shalt.err (!%p3305_p7)
}
0x19b0   :  { %s3330_s16 = smov 128  }
0x19b1   :  { %2574 = dma.vmem_to_hbm [thread:$0]  %s2569_s4, 256, %s3929_s9, [#allocation3], %s3330_s16, %s3330_s16, %s3324_s2  }
0x19b2   :  { %3309 = dma.done.wait [#allocation3], 256  }
0x19b3   :  { %3310 = vsyncadd [#allocation3], 4294967040 }
0x19b4   :  { %2582 = vsyncpa [#allocation3], 1 }

</bundles_post_ra>
